<compile_context>
chip_gen: v6e
topology: v6e:2x2x1
jax: 0.10.0
libtpu: 0.0.40
codegen_flags: <defaults>
</compile_context>

<pallas_src>
import math
import functools

import numpy as np
import jax
import jax.numpy as jnp
from jax.experimental import pallas as pl
from jax.experimental.pallas import tpu as pltpu


_LANE = 128
_SUBLANE = 8
_N_SPLITS = 2  # leading "parallel" grid axis (both TensorCores on v7x)


def _round_up(x: int, m: int) -> int:
    return ((x + m - 1) // m) * m


# ----------------------------------------------------------------------------
# Deterministic "parameters": hann window, DFT basis, HTK mel filterbank
# (what torchaudio's MelSpectrogram builds in __init__), zero-padded so every
# lane dimension is a multiple of 128.
# ----------------------------------------------------------------------------
def _hann_window(win_length: int) -> np.ndarray:
    n = np.arange(win_length, dtype=np.float64)
    return 0.5 - 0.5 * np.cos(2.0 * np.pi * n / win_length)


def _windowed_dft(n_fft: int, win_length: int):
    """Real/imag DFT matrices with the hann window folded in: (n_fft, n_freqs)."""
    n_freqs = n_fft // 2 + 1
    win = np.zeros(n_fft, dtype=np.float64)
    off = (n_fft - win_length) // 2
    win[off:off + win_length] = _hann_window(win_length)
    n = np.arange(n_fft, dtype=np.float64)[:, None]
    k = np.arange(n_freqs, dtype=np.float64)[None, :]
    ang = 2.0 * np.pi * n * k / n_fft
    cos_mat = (win[:, None] * np.cos(ang)).astype(np.float32)
    sin_mat = (win[:, None] * np.sin(ang)).astype(np.float32)
    return cos_mat, sin_mat


def _mel_filterbank(n_freqs: int, n_mels: int, sample_rate: float,
                    f_min: float, f_max: float) -> np.ndarray:
    """torchaudio.functional.melscale_fbanks (mel_scale='htk', norm=None)."""
    def hz_to_mel(f):
        return 2595.0 * np.log10(1.0 + f / 700.0)

    def mel_to_hz(m):
        return 700.0 * (10.0 ** (m / 2595.0) - 1.0)

    all_freqs = np.linspace(0.0, sample_rate / 2.0, n_freqs)
    m_pts = np.linspace(hz_to_mel(f_min), hz_to_mel(f_max), n_mels + 2)
    f_pts = mel_to_hz(m_pts)
    f_diff = f_pts[1:] - f_pts[:-1]                       # (n_mels+1,)
    slopes = f_pts[None, :] - all_freqs[:, None]          # (n_freqs, n_mels+2)
    down = -slopes[:, :-2] / f_diff[:-1]
    up = slopes[:, 2:] / f_diff[1:]
    fb = np.maximum(0.0, np.minimum(down, up))
    return fb.astype(np.float32)                          # (n_freqs, n_mels)


def _build_constants(n_fft, win_length, n_mels, sample_rate, f_min, f_max):
    """Fused cos||sin DFT weight and mel filterbank, lane-padded to 128s."""
    n_freqs = n_fft // 2 + 1
    n_freqs_pad = _round_up(n_freqs, _LANE)
    n_mels_pad = _round_up(n_mels, _LANE)

    cos_mat, sin_mat = _windowed_dft(n_fft, win_length)
    csin = np.zeros((n_fft, 2 * n_freqs_pad), dtype=np.float32)
    csin[:, :n_freqs] = cos_mat
    csin[:, n_freqs_pad:n_freqs_pad + n_freqs] = sin_mat

    mel_fb = _mel_filterbank(n_freqs, n_mels, sample_rate, f_min, f_max)
    mel_pad = np.zeros((n_freqs_pad, n_mels_pad), dtype=np.float32)
    mel_pad[:n_freqs, :n_mels] = mel_fb

    return jnp.asarray(csin), jnp.asarray(mel_pad), n_freqs_pad, n_mels_pad


# ----------------------------------------------------------------------------
# Padding glue (mirrors F.pad(..., 'reflect') + pad_for_conv1d).
# ----------------------------------------------------------------------------
def _get_extra_padding_for_conv1d(length: int, kernel_size: int, stride: int,
                                  padding_total: int = 0) -> int:
    n_frames = (length - kernel_size + padding_total) / stride + 1
    ideal_length = (math.ceil(n_frames) - 1) * stride + (kernel_size - padding_total)
    return ideal_length - length


def _pad_signal(x: jnp.ndarray, n_fft: int, hop_length: int):
    """x: (B, C, T) -> padded (B, C, L), L = (n_frames-1)*hop + n_fft exactly."""
    p = (n_fft - hop_length) // 2
    x = jnp.pad(x, ((0, 0), (0, 0), (p, p)), mode="reflect")
    length = x.shape[-1]
    extra = _get_extra_padding_for_conv1d(length, n_fft, hop_length, 0)
    if extra > 0:
        x = jnp.pad(x, ((0, 0), (0, 0), (0, extra)))
    length = x.shape[-1]
    n_frames = (length - n_fft) // hop_length + 1
    return x.astype(jnp.float32), n_frames


def _make_chunks(x_padded, n_frames, n_fft, hop_length, ratio, block_w,
                 chunk_idx):
    """Per-tile overlapping block chunks: (padded_tiles*rows_chunk, block_w)."""
    if ratio > 1:
        # hop divides n_fft: blocks are a pure reshape of the padded waveform.
        blocks = x_padded.reshape(-1, block_w)
    else:
        # Fallback: explicit (overlapping) frame gather when hop !| n_fft.
        idx = (np.arange(n_frames)[:, None] * hop_length
               + np.arange(n_fft)[None, :])
        blocks = x_padded[..., idx].reshape(-1, n_fft)
    return jnp.take(blocks, chunk_idx, axis=0)


# ----------------------------------------------------------------------------
# Pallas kernel: shifted-block fused-DFT STFT power -> mel -> log10 ->
# masked |sx - sy| accumulated in VMEM; single cross-lane reduce in epilogue.
# ----------------------------------------------------------------------------
def _mel_l1_kernel(bx_ref, by_ref, csin_ref, mel_ref, out_ref, acc_ref, *,
                   floor_level, n_freqs_pad, ratio, block_w, tile_rows,
                   n_tiles_per_item, n_frames, total_tiles):
    c = pl.program_id(0)
    i = pl.program_id(1)

    @pl.when(i == 0)
    def _init():
        acc_ref[...] = jnp.zeros_like(acc_ref)

    def log_mel(blk_ref):
        # Windowed DFT of a frame tile as a sum of `ratio` shifted-block
        # matmuls against hop-row slices of the fused cos||sin weight.
        cs = jnp.dot(blk_ref[0:tile_rows, :], csin_ref[0:block_w, :],
                     preferred_element_type=jnp.float32)
        for j in range(1, ratio):
            cs = cs + jnp.dot(blk_ref[j:j + tile_rows, :],
                              csin_ref[j * block_w:(j + 1) * block_w, :],
                              preferred_element_type=jnp.float32)
        re = cs[:, :n_freqs_pad]          # 128-aligned static slices (free views)
        im = cs[:, n_freqs_pad:]
        power = re * re + im * im                           # |STFT|^2
        mel = jnp.dot(power, mel_ref[...], preferred_element_type=jnp.float32)
        return jnp.log10(floor_level + mel)

    sx = log_mel(bx_ref)
    sy = log_mel(by_ref)

    # Mask rows that are item padding / grid padding (exact, VPU-only).
    g = c * pl.num_programs(1) + i
    tile_local = g % n_tiles_per_item
    row = jax.lax.broadcasted_iota(jnp.int32, (tile_rows, 1), 0)
    valid = (row + tile_local * tile_rows < n_frames) & (g < total_tiles)
    acc_ref[...] += jnp.where(valid, jnp.abs(sx - sy), 0.0)

    @pl.when(i == pl.num_programs(1) - 1)
    def _finalize():
        total = jnp.sum(acc_ref[...])     # single XLU reduction per core
        out_ref[...] = jnp.full(out_ref.shape, total, dtype=jnp.float32)


def mel_spectrogram_l1_loss(x, y, *, sample_rate, n_fft=1024, hop_length=256,
                            win_length=None, n_mels=80, f_min=0.0, f_max=None,
                            floor_level=1e-5, max_tile_rows=128):
    """x, y: (B, C, T) or (B, T) float32 waveforms -> scalar L1 loss."""
    if x.ndim == 2:
        x = x[:, None, :]
    if y.ndim == 2:
        y = y[:, None, :]
    if win_length is None:
        win_length = n_fft
    if f_max is None:
        f_max = sample_rate / 2.0

    csin, mel_fb, n_freqs_pad, n_mels_pad = _build_constants(
        n_fft, win_length, n_mels, sample_rate, f_min, f_max)

    x_pad, n_frames = _pad_signal(x, n_fft, hop_length)
    y_pad, _ = _pad_signal(y, n_fft, hop_length)

    B, C, _ = x.shape
    n_items = B * C
    R = n_items * n_frames                     # true number of frame rows

    # STFT frames as sums of hop-sized blocks (no 4x overlapping frame matrix
    # in HBM) when hop divides n_fft; otherwise fall back to framed input.
    if n_fft % hop_length == 0:
        ratio = n_fft // hop_length
        block_w = hop_length
        n_blocks_item = n_frames + ratio - 1   # padded len == n_blocks_item*hop
    else:
        ratio = 1
        block_w = n_fft
        n_blocks_item = n_frames

    # Row tiling: tiles never cross an item (B*C) boundary; each tile owns
    # `tile_rows` frames and reads a `rows_chunk`-row block chunk.
    n_tiles_per_item = -(-n_frames // max_tile_rows)
    tile_rows = _round_up(-(-n_frames // n_tiles_per_item), _SUBLANE)
    total_tiles = n_items * n_tiles_per_item
    tiles_per_split = -(-total_tiles // _N_SPLITS)
    padded_tiles = _N_SPLITS * tiles_per_split
    rows_chunk = _round_up(tile_rows + ratio - 1, _SUBLANE)

    # Static per-tile block-row indices (chunks overlap by ratio-1 rows only;
    # clipped / out-of-item rows feed exclusively masked frame rows).
    n_blocks_all = n_items * n_blocks_item
    gt = np.arange(padded_tiles)
    item = np.minimum(gt // n_tiles_per_item, n_items - 1)
    tile_local = gt % n_tiles_per_item
    starts = item * n_blocks_item + tile_local * tile_rows
    chunk_idx = np.clip(starts[:, None] + np.arange(rows_chunk)[None, :],
                        0, n_blocks_all - 1).reshape(-1).astype(np.int32)
    chunk_idx = jnp.asarray(chunk_idx)

    chunks_x = _make_chunks(x_pad, n_frames, n_fft, hop_length, ratio, block_w,
                            chunk_idx)
    chunks_y = _make_chunks(y_pad, n_frames, n_fft, hop_length, ratio, block_w,
                            chunk_idx)

    kernel = functools.partial(
        _mel_l1_kernel, floor_level=floor_level, n_freqs_pad=n_freqs_pad,
        ratio=ratio, block_w=block_w, tile_rows=tile_rows,
        n_tiles_per_item=n_tiles_per_item, n_frames=n_frames,
        total_tiles=total_tiles)

    chunk_spec = pl.BlockSpec(
        (rows_chunk, block_w),
        lambda c, i, tps=tiles_per_split: (c * tps + i, 0))

    partials = pl.pallas_call(
        kernel,
        out_shape=jax.ShapeDtypeStruct((_N_SPLITS * _SUBLANE, _LANE), jnp.float32),
        grid_spec=pltpu.PrefetchScalarGridSpec(
            num_scalar_prefetch=0,
            grid=(_N_SPLITS, tiles_per_split),
            in_specs=[
                chunk_spec,                                          # x blocks
                chunk_spec,                                          # y blocks
                pl.BlockSpec((n_fft, 2 * n_freqs_pad), lambda c, i: (0, 0)),
                pl.BlockSpec((n_freqs_pad, n_mels_pad), lambda c, i: (0, 0)),
            ],
            out_specs=pl.BlockSpec((_SUBLANE, _LANE), lambda c, i: (c, 0)),
            scratch_shapes=[pltpu.VMEM((tile_rows, n_mels_pad), jnp.float32)],
        ),
        compiler_params=pltpu.CompilerParams(
            dimension_semantics=("parallel", "arbitrary"),
            vmem_limit_bytes=48 * 1024 * 1024,
        ),
    )(chunks_x, chunks_y, csin, mel_fb)

    # One partial sum per split, broadcast over its (8,128) block.
    abs_sum = jnp.sum(partials[::_SUBLANE, 0])
    total_elems = R * n_mels              # true element count: B*(C*n_mels)*n_frames
    return abs_sum / jnp.float32(total_elems)


if __name__ == "__main__":
    # Small, deterministic example (scaled-down module hyper-params).
    B, C, T = 2, 1, 1024
    n_fft, hop_length, win_length, n_mels = 256, 64, 256, 16
    sample_rate = 22050

    key = jax.random.PRNGKey(0)
    kx, ky = jax.random.split(key)
    x = jax.random.normal(kx, (B, C, T), dtype=jnp.float32)
    y = jax.random.normal(ky, (B, C, T), dtype=jnp.float32)

    loss = mel_spectrogram_l1_loss(
        x, y,
        sample_rate=sample_rate, n_fft=n_fft, hop_length=hop_length,
        win_length=win_length, n_mels=n_mels, f_min=0.0, f_max=None,
        floor_level=1e-5,
    )
    loss = jax.block_until_ready(loss)
    assert jnp.isfinite(loss)
    print("KERNEL_OK")
</pallas_src>

<mosaic_0001>
module attributes {stable_mosaic.version = 11 : i64} {
  func.func @_mel_l1_kernel(%arg0: i32, %arg1: i32, %arg2: memref<24x64xf32, #tpu.memory_space<vmem>>, %arg3: memref<24x64xf32, #tpu.memory_space<vmem>>, %arg4: memref<256x512xf32, #tpu.memory_space<vmem>>, %arg5: memref<256x128xf32, #tpu.memory_space<vmem>>, %arg6: memref<8x128xf32, #tpu.memory_space<vmem>>, %arg7: memref<16x128xf32, #tpu.memory_space<vmem>>) attributes {dimension_semantics = [#tpu.dimension_semantics<parallel>, #tpu.dimension_semantics<arbitrary>], iteration_bounds = array<i64: 2, 1>, scalar_prefetch = 0 : i64, scratch_operands = 1 : i64, tpu.core_type = #tpu.core_type<tc>, window_params = [{transform_indices = @transform_0, window_bounds = array<i64: 24, 64>}, {transform_indices = @transform_1, window_bounds = array<i64: 24, 64>}, {pipeline_mode = #tpu.pipeline_mode<synchronous>, transform_indices = @transform_2, window_bounds = array<i64: 256, 512>}, {pipeline_mode = #tpu.pipeline_mode<synchronous>, transform_indices = @transform_3, window_bounds = array<i64: 256, 128>}, {transform_indices = @transform_4, window_bounds = array<i64: 8, 128>}]} {
    %c0_i32 = arith.constant 0 : i32
    %0 = arith.cmpi eq, %arg1, %c0_i32 : i32
    %1 = arith.extui %0 : i1 to i32
    %c0_i32_0 = arith.constant 0 : i32
    %2 = arith.cmpi ne, %1, %c0_i32_0 : i32
    scf.if %2 {
      %cst_57 = arith.constant 0.000000e+00 : f32
      %90 = vector.broadcast %cst_57 : f32 to vector<16x128xf32>
      %c0_58 = arith.constant 0 : index
      %c0_59 = arith.constant 0 : index
      %91 = vector.load %arg7[%c0_58, %c0_59] : memref<16x128xf32, #tpu.memory_space<vmem>>, vector<16x128xf32>
      tpu.vector_store %arg7[%c0_58, %c0_59], %90 {strides = array<i32>} : memref<16x128xf32, #tpu.memory_space<vmem>>, vector<16x128xf32>,
    } else {
    }
    %c0 = arith.constant 0 : index
    %c0_1 = arith.constant 0 : index
    %3 = vector.load %arg2[%c0, %c0_1] : memref<24x64xf32, #tpu.memory_space<vmem>>, vector<16x64xf32>
    %c0_2 = arith.constant 0 : index
    %c0_3 = arith.constant 0 : index
    %4 = vector.load %arg4[%c0_2, %c0_3] : memref<256x512xf32, #tpu.memory_space<vmem>>, vector<64x512xf32>
    %cst = arith.constant dense<0.000000e+00> : vector<16x512xf32>
    %5 = tpu.matmul %3, %4, %cst {dimension_numbers = #tpu.dot_dimension_numbers<[1], [0], [0], [1], [0, 0, 1, 1], [], []>} : vector<16x64xf32>, vector<64x512xf32>, vector<16x512xf32> -> vector<16x512xf32>
    %c1 = arith.constant 1 : index
    %c0_4 = arith.constant 0 : index
    %6 = vector.load %arg2[%c1, %c0_4] : memref<24x64xf32, #tpu.memory_space<vmem>>, vector<16x64xf32>
    %c64 = arith.constant 64 : index
    %c0_5 = arith.constant 0 : index
    %7 = vector.load %arg4[%c64, %c0_5] : memref<256x512xf32, #tpu.memory_space<vmem>>, vector<64x512xf32>
    %cst_6 = arith.constant dense<0.000000e+00> : vector<16x512xf32>
    %8 = tpu.matmul %6, %7, %cst_6 {dimension_numbers = #tpu.dot_dimension_numbers<[1], [0], [0], [1], [0, 0, 1, 1], [], []>} : vector<16x64xf32>, vector<64x512xf32>, vector<16x512xf32> -> vector<16x512xf32>
    %9 = arith.addf %5, %8 : vector<16x512xf32>
    %c2 = arith.constant 2 : index
    %c0_7 = arith.constant 0 : index
    %10 = vector.load %arg2[%c2, %c0_7] : memref<24x64xf32, #tpu.memory_space<vmem>>, vector<16x64xf32>
    %c128 = arith.constant 128 : index
    %c0_8 = arith.constant 0 : index
    %11 = vector.load %arg4[%c128, %c0_8] : memref<256x512xf32, #tpu.memory_space<vmem>>, vector<64x512xf32>
    %cst_9 = arith.constant dense<0.000000e+00> : vector<16x512xf32>
    %12 = tpu.matmul %10, %11, %cst_9 {dimension_numbers = #tpu.dot_dimension_numbers<[1], [0], [0], [1], [0, 0, 1, 1], [], []>} : vector<16x64xf32>, vector<64x512xf32>, vector<16x512xf32> -> vector<16x512xf32>
    %13 = arith.addf %9, %12 : vector<16x512xf32>
    %c3 = arith.constant 3 : index
    %c0_10 = arith.constant 0 : index
    %14 = vector.load %arg2[%c3, %c0_10] : memref<24x64xf32, #tpu.memory_space<vmem>>, vector<16x64xf32>
    %c192 = arith.constant 192 : index
    %c0_11 = arith.constant 0 : index
    %15 = vector.load %arg4[%c192, %c0_11] : memref<256x512xf32, #tpu.memory_space<vmem>>, vector<64x512xf32>
    %cst_12 = arith.constant dense<0.000000e+00> : vector<16x512xf32>
    %16 = tpu.matmul %14, %15, %cst_12 {dimension_numbers = #tpu.dot_dimension_numbers<[1], [0], [0], [1], [0, 0, 1, 1], [], []>} : vector<16x64xf32>, vector<64x512xf32>, vector<16x512xf32> -> vector<16x512xf32>
    %17 = arith.addf %13, %16 : vector<16x512xf32>
    %18 = vector.extract_strided_slice %17 {offsets = [0, 0], sizes = [16, 256], strides = [1, 1]} : vector<16x512xf32> to vector<16x256xf32>
    %19 = vector.extract_strided_slice %17 {offsets = [0, 256], sizes = [16, 256], strides = [1, 1]} : vector<16x512xf32> to vector<16x256xf32>
    %20 = arith.mulf %18, %18 : vector<16x256xf32>
    %21 = arith.mulf %19, %19 : vector<16x256xf32>
    %22 = arith.addf %20, %21 : vector<16x256xf32>
    %c0_13 = arith.constant 0 : index
    %c0_14 = arith.constant 0 : index
    %23 = vector.load %arg5[%c0_13, %c0_14] : memref<256x128xf32, #tpu.memory_space<vmem>>, vector<256x128xf32>
    %cst_15 = arith.constant dense<0.000000e+00> : vector<16x128xf32>
    %24 = tpu.matmul %22, %23, %cst_15 {dimension_numbers = #tpu.dot_dimension_numbers<[1], [0], [0], [1], [0, 0, 1, 1], [], []>} : vector<16x256xf32>, vector<256x128xf32>, vector<16x128xf32> -> vector<16x128xf32>
    %cst_16 = arith.constant 9.99999974E-6 : f32
    %25 = vector.broadcast %cst_16 : f32 to vector<16x128xf32>
    %26 = arith.addf %25, %24 : vector<16x128xf32>
    %27 = math.log %26 : vector<16x128xf32>
    %cst_17 = arith.constant 0.434294492 : f32
    %28 = vector.broadcast %cst_17 : f32 to vector<16x128xf32>
    %29 = arith.mulf %27, %28 : vector<16x128xf32>
    %c0_18 = arith.constant 0 : index
    %c0_19 = arith.constant 0 : index
    %30 = vector.load %arg3[%c0_18, %c0_19] : memref<24x64xf32, #tpu.memory_space<vmem>>, vector<16x64xf32>
    %c0_20 = arith.constant 0 : index
    %c0_21 = arith.constant 0 : index
    %31 = vector.load %arg4[%c0_20, %c0_21] : memref<256x512xf32, #tpu.memory_space<vmem>>, vector<64x512xf32>
    %cst_22 = arith.constant dense<0.000000e+00> : vector<16x512xf32>
    %32 = tpu.matmul %30, %31, %cst_22 {dimension_numbers = #tpu.dot_dimension_numbers<[1], [0], [0], [1], [0, 0, 1, 1], [], []>} : vector<16x64xf32>, vector<64x512xf32>, vector<16x512xf32> -> vector<16x512xf32>
    %c1_23 = arith.constant 1 : index
    %c0_24 = arith.constant 0 : index
    %33 = vector.load %arg3[%c1_23, %c0_24] : memref<24x64xf32, #tpu.memory_space<vmem>>, vector<16x64xf32>
    %c64_25 = arith.constant 64 : index
    %c0_26 = arith.constant 0 : index
    %34 = vector.load %arg4[%c64_25, %c0_26] : memref<256x512xf32, #tpu.memory_space<vmem>>, vector<64x512xf32>
    %cst_27 = arith.constant dense<0.000000e+00> : vector<16x512xf32>
    %35 = tpu.matmul %33, %34, %cst_27 {dimension_numbers = #tpu.dot_dimension_numbers<[1], [0], [0], [1], [0, 0, 1, 1], [], []>} : vector<16x64xf32>, vector<64x512xf32>, vector<16x512xf32> -> vector<16x512xf32>
    %36 = arith.addf %32, %35 : vector<16x512xf32>
    %c2_28 = arith.constant 2 : index
    %c0_29 = arith.constant 0 : index
    %37 = vector.load %arg3[%c2_28, %c0_29] : memref<24x64xf32, #tpu.memory_space<vmem>>, vector<16x64xf32>
    %c128_30 = arith.constant 128 : index
    %c0_31 = arith.constant 0 : index
    %38 = vector.load %arg4[%c128_30, %c0_31] : memref<256x512xf32, #tpu.memory_space<vmem>>, vector<64x512xf32>
    %cst_32 = arith.constant dense<0.000000e+00> : vector<16x512xf32>
    %39 = tpu.matmul %37, %38, %cst_32 {dimension_numbers = #tpu.dot_dimension_numbers<[1], [0], [0], [1], [0, 0, 1, 1], [], []>} : vector<16x64xf32>, vector<64x512xf32>, vector<16x512xf32> -> vector<16x512xf32>
    %40 = arith.addf %36, %39 : vector<16x512xf32>
    %c3_33 = arith.constant 3 : index
    %c0_34 = arith.constant 0 : index
    %41 = vector.load %arg3[%c3_33, %c0_34] : memref<24x64xf32, #tpu.memory_space<vmem>>, vector<16x64xf32>
    %c192_35 = arith.constant 192 : index
    %c0_36 = arith.constant 0 : index
    %42 = vector.load %arg4[%c192_35, %c0_36] : memref<256x512xf32, #tpu.memory_space<vmem>>, vector<64x512xf32>
    %cst_37 = arith.constant dense<0.000000e+00> : vector<16x512xf32>
    %43 = tpu.matmul %41, %42, %cst_37 {dimension_numbers = #tpu.dot_dimension_numbers<[1], [0], [0], [1], [0, 0, 1, 1], [], []>} : vector<16x64xf32>, vector<64x512xf32>, vector<16x512xf32> -> vector<16x512xf32>
    %44 = arith.addf %40, %43 : vector<16x512xf32>
    %45 = vector.extract_strided_slice %44 {offsets = [0, 0], sizes = [16, 256], strides = [1, 1]} : vector<16x512xf32> to vector<16x256xf32>
    %46 = vector.extract_strided_slice %44 {offsets = [0, 256], sizes = [16, 256], strides = [1, 1]} : vector<16x512xf32> to vector<16x256xf32>
    %47 = arith.mulf %45, %45 : vector<16x256xf32>
    %48 = arith.mulf %46, %46 : vector<16x256xf32>
    %49 = arith.addf %47, %48 : vector<16x256xf32>
    %c0_38 = arith.constant 0 : index
    %c0_39 = arith.constant 0 : index
    %50 = vector.load %arg5[%c0_38, %c0_39] : memref<256x128xf32, #tpu.memory_space<vmem>>, vector<256x128xf32>
    %cst_40 = arith.constant dense<0.000000e+00> : vector<16x128xf32>
    %51 = tpu.matmul %49, %50, %cst_40 {dimension_numbers = #tpu.dot_dimension_numbers<[1], [0], [0], [1], [0, 0, 1, 1], [], []>} : vector<16x256xf32>, vector<256x128xf32>, vector<16x128xf32> -> vector<16x128xf32>
    %cst_41 = arith.constant 9.99999974E-6 : f32
    %52 = vector.broadcast %cst_41 : f32 to vector<16x128xf32>
    %53 = arith.addf %52, %51 : vector<16x128xf32>
    %54 = math.log %53 : vector<16x128xf32>
    %cst_42 = arith.constant 0.434294492 : f32
    %55 = vector.broadcast %cst_42 : f32 to vector<16x128xf32>
    %56 = arith.mulf %54, %55 : vector<16x128xf32>
    %c1_i32 = arith.constant 1 : i32
    %57 = arith.muli %arg0, %c1_i32 : i32
    %58 = arith.addi %57, %arg1 : i32
    %c1_i32_43 = arith.constant 1 : i32
    %c0_i32_44 = arith.constant 0 : i32
    %59 = arith.cmpi eq, %c1_i32_43, %c0_i32_44 : i32
    %c1_i32_45 = arith.constant 1 : i32
    %60 = arith.select %59, %c1_i32_45, %c1_i32_43 : i32
    %61 = arith.remsi %58, %60 : i32
    %c0_i32_46 = arith.constant 0 : i32
    %62 = arith.cmpi ne, %61, %c0_i32_46 : i32
    %c0_i32_47 = arith.constant 0 : i32
    %63 = arith.cmpi slt, %61, %c0_i32_47 : i32
    %c0_i32_48 = arith.constant 0 : i32
    %64 = arith.cmpi slt, %60, %c0_i32_48 : i32
    %65 = arith.xori %63, %64 : i1
    %66 = arith.andi %65, %62 : i1
    %67 = arith.addi %61, %60 : i32
    %68 = arith.select %66, %67, %61 : i32
    %69 = tpu.iota {dimensions = array<i32: 0>} : vector<16x1xi32>
    %c16_i32 = arith.constant 16 : i32
    %70 = arith.muli %68, %c16_i32 : i32
    %71 = vector.broadcast %70 : i32 to vector<16x1xi32>
    %72 = arith.addi %69, %71 : vector<16x1xi32>
    %c16_i32_49 = arith.constant 16 : i32
    %73 = vector.broadcast %c16_i32_49 : i32 to vector<16x1xi32>
    %74 = arith.cmpi slt, %72, %73 : vector<16x1xi32>
    %c2_i32 = arith.constant 2 : i32
    %75 = arith.cmpi slt, %58, %c2_i32 : i32
    %76 = vector.broadcast %75 : i1 to vector<16x1xi1>
    %77 = arith.andi %74, %76 : vector<16x1xi1>
    %c0_50 = arith.constant 0 : index
    %c0_51 = arith.constant 0 : index
    %78 = vector.load %arg7[%c0_50, %c0_51] : memref<16x128xf32, #tpu.memory_space<vmem>>, vector<16x128xf32>
    %79 = arith.subf %29, %56 : vector<16x128xf32>
    %80 = math.absf %79 : vector<16x128xf32>
    %cst_52 = arith.constant 0.000000e+00 : f32
    %81 = vector.shape_cast %77 : vector<16x1xi1> to vector<16x1xi1>
    %82 = vector.broadcast %81 : vector<16x1xi1> to vector<16x128xi1>
    %83 = vector.broadcast %cst_52 : f32 to vector<16x128xf32>
    %84 = arith.select %82, %80, %83 : vector<16x128xi1>, vector<16x128xf32>
    %85 = arith.addf %78, %84 : vector<16x128xf32>
    %c0_53 = arith.constant 0 : index
    %c0_54 = arith.constant 0 : index
    %86 = vector.load %arg7[%c0_53, %c0_54] : memref<16x128xf32, #tpu.memory_space<vmem>>, vector<16x128xf32>
    tpu.vector_store %arg7[%c0_53, %c0_54], %85 {strides = array<i32>} : memref<16x128xf32, #tpu.memory_space<vmem>>, vector<16x128xf32>,
    %c0_i32_55 = arith.constant 0 : i32
    %87 = arith.cmpi eq, %arg1, %c0_i32_55 : i32
    %88 = arith.extui %87 : i1 to i32
    %c0_i32_56 = arith.constant 0 : i32
    %89 = arith.cmpi ne, %88, %c0_i32_56 : i32
    scf.if %89 {
      %c0_57 = arith.constant 0 : index
      %c0_58 = arith.constant 0 : index
      %90 = vector.load %arg7[%c0_57, %c0_58] : memref<16x128xf32, #tpu.memory_space<vmem>>, vector<16x128xf32>
      %91 = vector.shape_cast %90 : vector<16x128xf32> to vector<1x16x128xf32>
      %cst_59 = arith.constant dense<0.000000e+00> : vector<1xf32>
      %92 = vector.multi_reduction <add>, %91, %cst_59 [1, 2] : vector<1x16x128xf32> to vector<1xf32>
      %93 = vector.shape_cast %92 : vector<1xf32> to vector<1x1x1xf32>
      %94 = vector.extract %93[0, 0, 0] : f32 from vector<1x1x1xf32>
      %95 = vector.broadcast %94 : f32 to vector<8x128xf32>
      %c0_60 = arith.constant 0 : index
      %c0_61 = arith.constant 0 : index
      %96 = vector.load %arg6[%c0_60, %c0_61] : memref<8x128xf32, #tpu.memory_space<vmem>>, vector<8x128xf32>
      tpu.vector_store %arg6[%c0_60, %c0_61], %95 {strides = array<i32>} : memref<8x128xf32, #tpu.memory_space<vmem>>, vector<8x128xf32>,
    } else {
    }
    return
  }
  func.func @transform_0(%arg0: i32, %arg1: i32) -> (i32, i32) {
    %c1_i32 = arith.constant 1 : i32
    %0 = arith.muli %arg0, %c1_i32 : i32
    %1 = arith.addi %0, %arg1 : i32
    %c0_i32 = arith.constant 0 : i32
    %c0_i32_0 = arith.constant 0 : i32
    return %1, %c0_i32 : i32, i32
  }
  func.func @transform_1(%arg0: i32, %arg1: i32) -> (i32, i32) {
    %c1_i32 = arith.constant 1 : i32
    %0 = arith.muli %arg0, %c1_i32 : i32
    %1 = arith.addi %0, %arg1 : i32
    %c0_i32 = arith.constant 0 : i32
    %c0_i32_0 = arith.constant 0 : i32
    return %1, %c0_i32 : i32, i32
  }
  func.func @transform_2(%arg0: i32, %arg1: i32) -> (i32, i32) {
    %c0_i32 = arith.constant 0 : i32
    %c0_i32_0 = arith.constant 0 : i32
    %c0_i32_1 = arith.constant 0 : i32
    return %c0_i32, %c0_i32_0 : i32, i32
  }
  func.func @transform_3(%arg0: i32, %arg1: i32) -> (i32, i32) {
    %c0_i32 = arith.constant 0 : i32
    %c0_i32_0 = arith.constant 0 : i32
    %c0_i32_1 = arith.constant 0 : i32
    return %c0_i32, %c0_i32_0 : i32, i32
  }
  func.func @transform_4(%arg0: i32, %arg1: i32) -> (i32, i32) {
    %c0_i32 = arith.constant 0 : i32
    %c0_i32_0 = arith.constant 0 : i32
    return %arg0, %c0_i32 : i32, i32
  }
}

</mosaic_0001>

<bundles_post_ra>
// kernel: tpu_custom_call.1
= control target key start
LH: loop header
LB: loop body
LE: loop exit
PB: predicated region body
PF: predicated region fallthrough
CT: control target
= control target key end

     0   :  { %s3600_s0 = inlined_call_operand.hbm [shape: f32[48,64], index: 0, kind: input, shape index: {}]   ;;  %s3601_s1 = inlined_call_operand.hbm [shape: f32[48,64], index: 1, kind: input, shape index: {}]   ;;  %s3602_s2 = inlined_call_operand.hbm [shape: f32[256,512], index: 2, kind: input, shape index: {}]   ;;  %s3603_s3 = inlined_call_operand.hbm [shape: f32[256,128], index: 3, kind: input, shape index: {}]   ;;  %s3604_s4 = inlined_call_operand.hbm [shape: f32[16,128], index: 4, kind: output, shape index: {}]  }
   0x1   :  { %3691 = sst [smem:[#allocation78_spill]] %s3600_s0 }
   0x2   :  { %3692 = sst [smem:[#allocation79_spill]] %s3602_s2 }
   0x3   :  { %3693 = sst [smem:[#allocation80_spill]] %s3603_s3 }
   0x4   :  { %9 = vsyncpa [#allocation4], 0 }
   0x5   :  { %11 = vsyncpa [#allocation4 + $0x1], 0 }
   0x6   :  { %12 = vsyncpa [#allocation7], 0 }
   0x7   :  { %14 = vsyncpa [#allocation7 + $0x1], 0 }
   0x8   :  { %15 = vsyncpa [#allocation10], 0 }
   0x9   :  { %16 = vsyncpa [#allocation5], 0 }
   0xa   :  { %18 = vsyncpa [#allocation5 + $0x1], 0  ;;  %s2648_s15 = smov 0   ;;  %s2650_s16 = smov 0  }
   0xb   :  { %s2652_s17 = smov 0   ;;  %s2654_s18 = smov 0  }
   0xc   :  { %s2656_s19 = smov 0   ;;  %s2658_s20 = smov 0  }
   0xd LB: > { %3694 = sst [smem:[#allocation17_spill]] %s2607_s19  ;;  %s2679_s21 = sadd.s32 4294967295, %s2611_s20   ;;  %s2611_s20 = sphi %s2658_s20, %s24_s20   ;;  %s2607_s19 = sphi %s2656_s19, %s3872_s19   ;;  %s2603_s18 = sphi %s2654_s18, %s3871_s18   ;;  %s2599_s17 = sphi %s2652_s17, %s3875_s17   ;;  %s2595_s16 = sphi %s2650_s16, %s3874_s16   ;;  %s2591_s15 = sphi %s2648_s15, %s3873_s15  }
   0xe   : > { %s2170_s22 = sadd.s32 4294967294, %s2611_s20   ;;  %p58_p0 = scmp.ne.s32.totalorder %s2595_s16, %s2591_s15 }
   0xf   : > { %p3605_p1 = scmp.eq.s32.totalorder %s2679_s21, 0  ;;  %p158_p3 = scmp.eq.s32.totalorder %s2170_s22, 1 }
  0x10   : > { %p2171_p5 = scmp.ge.s32.totalorder %s2611_s20, 1  ;;  %p165_p7 = scmp.lt.s32.totalorder %s2611_s20, 3 }
  0x11   : > { %p2688_p4 = por %p3605_p1, %p58_p0  ;;  %p2693_p6 = por %p158_p3, %p58_p0 }
  0x12   : > { %p2698_p8 = pnand %p2171_p5, %p165_p7  ;;  %s2613_s26 = smov [#allocation8]  }
  0x13   : > { %s3696_s24 = scalar_select %p2693_p6, 1, 0 }
  0x14   : > { %s177_s27 = sshll.u32 %s2613_s26, 4  ;;  %p2314_p9 = pneg %p2698_p8  ;;  %s178_s27 = int_to_ptr.vmem [resolvable:$true] %s177_s27 }
  0x15   : > { %s2614_s29 = smov [#allocation9]   ;;  %s2422_s5 = scalar_lea.vmem %s178_s27, 16384 }
  0x16   : > { %p2707_p11 = pnand %p2314_p9, %p3605_p1  ;;  %s190_s30 = sshll.u32 %s2614_s29, 4  ;;  %s191_s30 = int_to_ptr.vmem [resolvable:$true] %s190_s30 }
  0x17   : > { %p2423_p13 = scmp.ne.s32.totalorder %s178_s27, %s2422_s5  ;;  %p2430_p5 = scmp.lt.s32.totalorder %s178_s27, %s178_s27 }
  0x18   : > { %p2413_p12 = pneg %p2707_p11  ;;  %p2431_p7 = scmp.lt.s32.totalorder %s2422_s5, %s2422_s5 }
  0x1a   : > { %p2425_p0 = pnand %p2423_p13, %p2413_p12  ;;  %p2432_p10 = por %p2431_p7, %p2430_p5 }
  0x1c   : > { %p2426_p3 = pneg %p2425_p0 }
  0x1e   : > { %p2433_p9 = pnand %p2432_p10, %p2426_p3 }
  0x20   : > { %2436 = shalt.err (!%p2433_p9)
}
  0x21   : > { %s2615_s6 = smov 512   ;;  %s2616_s7 = smov 32  }
  0x22   : > { %s3699_s2 = sld [smem:[#allocation79_spill]]  ;;  %s2448_s10 = scalar_lea.vmem %s191_s30, 4096 }
  0x23   : > { %p2449_p1 = scmp.ne.s32.totalorder %s191_s30, %s2448_s10  ;;  %p2456_p2 = scmp.lt.s32.totalorder %s191_s30, %s191_s30 }
  0x24   : > { %p2457_p6 = scmp.lt.s32.totalorder %s2448_s10, %s2448_s10 }
  0x25   : > { %p2451_p13 = pnand %p2449_p1, %p2413_p12 }
  0x26   : > { %p2458_p5 = por %p2457_p6, %p2456_p2 }
  0x27   : > { %p2452_p0 = pneg %p2451_p13 }
  0x28   : > { %2317 = dma.hbm_to_vmem [thread:$0]  (!%p2707_p11), %s3699_s2, 16384, %s178_s27, [#allocation7], %s2615_s6, %s2615_s6, %s2616_s7  }
  0x29   : > { %p2459_p10 = pnand %p2458_p5, %p2452_p0 }
  0x2b   : > { %2462 = shalt.err (!%p2459_p10)
}
  0x2c   : > { %s3606_s11 = smov 128   ;;  %s3608_s12 = smov 8  }
  0x2d   : > { %s3700_s3 = sld [smem:[#allocation80_spill]]  ;;  %s36_s22 = sadd.s32 1, %s2607_s19 }
  0x2e   : > { %s45_s26 = sadd.s32 1, %s2599_s17  ;;  %p38_p1 = scmp.ge.s32.totalorder %s36_s22, 2 }
  0x2f   : > { %p52_p2 = scmp.ne.s32.totalorder %s2599_s17, %s2595_s16  ;;  %p53_p6 = scmp.eq.s32.totalorder %s2611_s20, 0 }
  0x30   : > { %p2334_p12 = scmp.lt.s32.totalorder %s2611_s20, 2  ;;  %s3877_s22 = smov (%p38_p1, %s36_s22), 0 }
  0x31   : > { %3701 = sst [smem:[#allocation18_spill]] %s3877_s22  ;;  %p54_p3 = por %p53_p6, %p52_p2 }
  0x32   : > { %p3702_p7 = scmp.eq.s32.totalorder %s2679_s21, 1  ;;  %s42_s28 = ssub.s32 %s2607_s19, %s3877_s22 }
  0x33   : > { %2320 = dma.hbm_to_vmem [thread:$0]  (!%p2707_p11), %s3700_s3, 4096, %s191_s30, [#allocation10], %s3606_s11, %s3606_s11, %s3608_s12  }
  0x34   : > { %p2742_p9 = por %p3702_p7, %p52_p2  ;;  %s204_s29 = sand.u32 1, %s2599_s17  }
  0x35   : > { %p43_p13 = scmp.eq.s32.totalorder %s42_s28, 0  ;;  %s2295_s30 = smul.u32 24, %s204_s29 }
  0x36   : > { %p2749_p11 = pnand %p2334_p12, %p54_p3  ;;  %s2217_s7 = smul.u32 384, %s2607_s19 }
  0x37   : > { %s2754_s6 = scalar_select %p43_p13, %s2599_s17, %s45_s26  }
  0x38   : > { %s208_s8 = scalar_lea.vmem [#allocation3], %s2295_s30  ;;  %s3706_s0 = sld [smem:[#allocation78_spill]] }
  0x39   : > { %3705 = sst [smem:[#allocation19_spill]] %s2754_s6  ;;  %s216_s9 = sshll.u32 %s208_s8, 4  ;;  %s217_s9 = int_to_ptr.vmem [resolvable:$true] %s216_s9 }
  0x3a   : > { %s205_s11 = scalar_lea.sflag [#allocation4], %s204_s29  ;;  %p2465_p0 = pneg %p2749_p11 }
  0x3b   : > { %s2476_s28 = scalar_lea.vmem %s217_s9, 384  ;;  %s2619_s12 = smov [#allocation3]  }
  0x3c   : > { %p2477_p5 = scmp.ne.s32.totalorder %s217_s9, %s2476_s28  ;;  %s2481_s26 = sshll.u32 %s2619_s12, 4  ;;  %s2482_s26 = int_to_ptr.vmem [resolvable:$false] %s2481_s26 }
  0x3d   : > { %s2483_s2 = scalar_lea.vmem %s2482_s26, 768  ;;  %p2484_p2 = scmp.lt.s32.totalorder %s217_s9, %s2482_s26 }
  0x3e   : > { %s215_s14 = scalar_lea.hbm %s3706_s0, %s2217_s7  ;;  %p2479_p10 = pnand %p2477_p5, %p2465_p0 }
  0x3f   : > { %p2485_p6 = scmp.lt.s32.totalorder %s2483_s2, %s2476_s28 }
  0x40   : > { %p2480_p1 = pneg %p2479_p10 }
  0x41   : > { %p2486_p12 = por %p2485_p6, %p2484_p2 }
  0x43   : > { %p2487_p3 = pnand %p2486_p12, %p2480_p1 }
  0x45   : > { %2490 = shalt.err (!%p2487_p3)
}
  0x46   : > { %s3707_s29 = smov 8   ;;  %s3708_s8 = smov 128  }
  0x47   : > { %2324 = dma.hbm_to_vmem [thread:$0]  (!%p2749_p11), %s215_s14, 384, %s217_s9, %s205_s11, %s3708_s8, %s3708_s8, %s3707_s29  }
  0x48   : > { %s226_s10 = sand.u32 1, %s2611_s20   ;;  %s237_s12 = scalar_lea.hbm %s3601_s1, %s2217_s7 }
  0x49   : > { %s230_s3 = scalar_lea.vmem [#allocation6], %s2295_s30  ;;  %s227_s2 = scalar_lea.sflag [#allocation7], %s226_s10 }
  0x4a   : > { %s238_s22 = sshll.u32 %s230_s3, 4  ;;  %s2620_s26 = smov [#allocation6]   ;;  %s239_s22 = int_to_ptr.vmem [resolvable:$true] %s238_s22 }
  0x4b   : > { %s2504_s28 = scalar_lea.vmem %s239_s22, 384  ;;  %s2509_s19 = sshll.u32 %s2620_s26, 4  ;;  %s2510_s19 = int_to_ptr.vmem [resolvable:$false] %s2509_s19 }
  0x4c   : > { %p2505_p7 = scmp.ne.s32.totalorder %s239_s22, %s2504_s28  ;;  %s2511_s6 = scalar_lea.vmem %s2510_s19, 768 }
  0x4d   : > { %p2512_p10 = scmp.lt.s32.totalorder %s239_s22, %s2510_s19  ;;  %p2513_p1 = scmp.lt.s32.totalorder %s2511_s6, %s2504_s28 }
  0x4e   : > { %p2507_p13 = pnand %p2505_p7, %p2465_p0 }
  0x4f   : > { %p2514_p2 = por %p2513_p1, %p2512_p10 }
  0x50   : > { %p2508_p5 = pneg %p2507_p13 }
  0x52   : > { %p2515_p6 = pnand %p2514_p2, %p2508_p5 }
  0x54   : > { %2518 = shalt.err (!%p2515_p6)
}
  0x55   : > { %2327 = dma.hbm_to_vmem [thread:$0]  (!%p2749_p11), %s237_s12, 384, %s239_s22, %s227_s2, %s3708_s8, %s3708_s8, %s3707_s29  }
  0x56   : > { %250 = sbr.rel (%p2698_p8) target bundleno = 1089 (0x441), region = 36 }
  0x5b   : > { %s2785_s0 = sand.u32 1, %s2595_s16  }
  0x5c   : > { %s2297_s3 = smul.u32 24, %s2785_s0  ;;  %s253_s19 = scalar_lea.sflag [#allocation4], %s2785_s0 }
  0x5e   : > { %s2789_s11 = scalar_lea.vmem [#allocation3], %s2297_s3 }
  0x5f   : > { %2570 = dma.done.wait (%p2688_p4), %s253_s19, 384  }
  0x60   : > { %2572 = vsyncadd (%p2688_p4), %s253_s19, 4294966912  ;;  %s261_s22 = sand.u32 1, %s2679_s21   ;;  %s2796_s30 = scalar_lea.vmem [#allocation6], %s2297_s3 }
  0x61   : > { %s262_s25 = scalar_lea.sflag [#allocation7], %s261_s22 }
  0x62   : > { %2574 = dma.done.wait (%p2688_p4), %s262_s25, 384  }
  0x63   : > { %2576 = vsyncadd (%p2688_p4), %s262_s25, 4294966912  ;;  %p3709_p8 = scmp.eq.s32.totalorder %s2679_s21, 0 }
  0x65   : > { %2578 = dma.done.wait (%p3709_p8), [#allocation7], 16384   ;;  %p3710_p11 = pmov %p3709_p8 }
  0x66   : > { %p3711_p0 = pmov %p3709_p8 }
  0x67   : > { %2580 = vsyncadd (%p3710_p11), [#allocation7], 4294950912 }
  0x68   : > { %2582 = dma.done.wait (%p3711_p0), [#allocation10], 4096   ;;  %p3712_p12 = pmov %p3711_p0 }
  0x69   : > { %v3614_v0 = vmov 0.0   ;;  %v2812_v1 = vld [vmem:[#allocation8 + $0x1e8] sm:$0xff]  ;;  %v2816_v3 = vld [vmem:[#allocation8 + $0x1e0] sm:$0xff]  ;;  %vm381_vm0 = vcmask 523264   ;;  %v2877_v34 = vld [vmem:[#allocation8 + $0x1f8] sm:$0xff]  ;;  %p1994_p4 = scmp.lt.s32.totalorder %s2603_s18, 2 }
  0x6a   : > { %2584 = vsyncadd (%p3712_p12), [#allocation10], 4294963200  ;;  %452 = vmatprep.mubr.f32.mxu1 %v3614_v0  ;;  %612 = vmatprep.mubr.f32.mxu0 %v3614_v0  ;;  %v2814_v2 = vld [vmem:[#allocation8 + $0xe8] sm:$0xff]  ;;  %v343_v4 = vld [vmem:[#allocation8 + $0xe0] sm:$0xff]  ;;  %s2180_s23 = sshll.u32 %s2785_s0, 3  ;;  %s2214_s7 = sshll.u32 %s2603_s18, 7 }
  0x6b   : > { %3713 = vst [vmem:[#allocation20_spill] sm:$0xff] %v2814_v2  ;;  %404 = vmatprep.subr.mxu1 %v2812_v1  ;;  %564 = vmatprep.subr.mxu0 %v2814_v2  ;;  %v2820_v5 = vld [vmem:[#allocation8 + $0x1c8] sm:$0xff]  ;;  %v2823_v7 = vld [vmem:[#allocation8 + $0x1c0] sm:$0xff]  ;;  %v2888_v37 = vld [vmem:[#allocation8 + $0x1f0] sm:$0xff]  ;;  %s1995_s21 = scalar_select %p1994_p4, 1, 0 }
  0x6c   : > { %v340_v6 = vld [vmem:[#allocation8 + $0xc8] sm:$0xff]  ;;  %405 = vmatpush1.msra.mxu1 %v2816_v3  ;;  %565 = vmatpush1.msra.mxu0 %v343_v4  ;;  %v339_v8 = vld [vmem:[#allocation8 + $0xc0] sm:$0xff]  ;;  %v2895_v39 = vld [vmem:[#allocation8 + $0x1d8] sm:$0xff]  ;;  %s302_s5 = scalar_lea.vmem [#allocation11], %s2180_s23  ;;  %s2045_s8 = scalar_lea.hbm %s3604_s4, %s2214_s7 }
  0x6d   : > { %v2825_v9 = vld [vmem:[#allocation8 + $0x1a8] sm:$0xff]  ;;  %406 = vmatprep.subr.mxu1 %v2820_v5  ;;  %566 = vmatprep.subr.mxu0 %v340_v6  ;;  %v2828_v11 = vld [vmem:[#allocation8 + $0x1a0] sm:$0xff]  ;;  %v2902_v41 = vld [vmem:[#allocation8 + $0x1d0] sm:$0xff]  ;;  %s2047_s6 = sshll.u32 %s302_s5, 4  ;;  %s2034_s10 = scalar_lea.sflag [#allocation5], %s2785_s0  ;;  %s3555_s6 = int_to_ptr.vmem [resolvable:$true] %s2047_s6 }
  0x6e   : > { %v336_v10 = vld [vmem:[#allocation8 + $0xa8] sm:$0xff]  ;;  %v335_v12 = vld [vmem:[#allocation8 + $0xa0] sm:$0xff]  ;;  %407 = vmatpush1.msra.mxu1 %v2823_v7  ;;  %567 = vmatpush1.msra.mxu0 %v339_v8  ;;  %v2908_v43 = vld [vmem:[#allocation8 + $0x1b8] sm:$0xff]  ;;  %s2519_s13 = scalar_lea.vmem %s3555_s6, 128  ;;  %s2622_s12 = smov [#allocation11]  }
  0x6f   : > { %v2831_v13 = vld [vmem:[#allocation8 + $0x188] sm:$0xff]  ;;  %408 = vmatprep.subr.mxu1 %v2825_v9  ;;  %568 = vmatprep.subr.mxu0 %v336_v10  ;;  %v2834_v15 = vld [vmem:[#allocation8 + $0x180] sm:$0xff]  ;;  %v2914_v45 = vld [vmem:[#allocation8 + $0x1b0] sm:$0xff]  ;;  %p2520_p3 = scmp.ne.s32.totalorder %s3555_s6, %s2519_s13  ;;  %s2523_s18 = sshll.u32 %s2622_s12, 4  ;;  %s2524_s18 = int_to_ptr.vmem [resolvable:$false] %s2523_s18 }
  0x70   : > { %v332_v14 = vld [vmem:[#allocation8 + $0x88] sm:$0xff]  ;;  %v331_v16 = vld [vmem:[#allocation8 + $0x80] sm:$0xff]  ;;  %409 = vmatpush1.msra.mxu1 %v2828_v11  ;;  %569 = vmatpush1.msra.mxu0 %v335_v12  ;;  %v2920_v47 = vld [vmem:[#allocation8 + $0x198] sm:$0xff]  ;;  %s2525_s2 = scalar_lea.vmem %s2524_s18, 256  ;;  %p2526_p5 = scmp.lt.s32.totalorder %s3555_s6, %s2524_s18 }
  0x71   : > { %v2837_v17 = vld [vmem:[#allocation8 + $0x168] sm:$0xff]  ;;  %410 = vmatprep.subr.mxu1 %v2831_v13  ;;  %570 = vmatprep.subr.mxu0 %v332_v14  ;;  %v2840_v19 = vld [vmem:[#allocation8 + $0x160] sm:$0xff]  ;;  %v2926_v49 = vld [vmem:[#allocation8 + $0x190] sm:$0xff]  ;;  %p2521_p7 = pnand %p2520_p3, %p2742_p9  ;;  %p2527_p10 = scmp.lt.s32.totalorder %s2525_s2, %s2519_s13 }
  0x72   : > { %v328_v18 = vld [vmem:[#allocation8 + $0x68] sm:$0xff]  ;;  %v327_v20 = vld [vmem:[#allocation8 + $0x60] sm:$0xff]  ;;  %411 = vmatpush1.msra.mxu1 %v2834_v15  ;;  %571 = vmatpush1.msra.mxu0 %v331_v16  ;;  %v2932_v51 = vld [vmem:[#allocation8 + $0x178] sm:$0xff] }
  0x73   : > { %v2843_v21 = vld [vmem:[#allocation8 + $0x148] sm:$0xff]  ;;  %412 = vmatprep.subr.mxu1 %v2837_v17  ;;  %572 = vmatprep.subr.mxu0 %v328_v18  ;;  %v2846_v23 = vld [vmem:[#allocation8 + $0x140] sm:$0xff]  ;;  %v2938_v53 = vld [vmem:[#allocation8 + $0x170] sm:$0xff]  ;;  %p2522_p13 = pneg %p2521_p7  ;;  %p2528_p1 = por %p2527_p10, %p2526_p5 }
  0x74   : > { %v324_v22 = vld [vmem:[#allocation8 + $0x48] sm:$0xff]  ;;  %v2848_v24 = vld [vmem:[#allocation8 + $0x40] sm:$0xff]  ;;  %413 = vmatpush1.msra.mxu1 %v2840_v19  ;;  %573 = vmatpush1.msra.mxu0 %v327_v20  ;;  %v2944_v55 = vld [vmem:[#allocation8 + $0x158] sm:$0xff] }
  0x75   : > { %3714 = vst [vmem:[#allocation21_spill] sm:$0xff] %v2848_v24  ;;  %v2851_v25 = vld [vmem:[#allocation8 + $0x128] sm:$0xff]  ;;  %414 = vmatprep.subr.mxu1 %v2843_v21  ;;  %574 = vmatprep.subr.mxu0 %v324_v22  ;;  %v2856_v27 = vld [vmem:[#allocation8 + $0x120] sm:$0xff]  ;;  %v2960_v59 = vld [vmem:[#allocation8 + $0x150] sm:$0xff]  ;;  %p2529_p2 = pnand %p2528_p1, %p2522_p13 }
  0x76   : > { %v2853_v26 = vld [vmem:[#allocation8 + $0x28] sm:$0xff]  ;;  %v2858_v28 = vld [vmem:[#allocation8 + $0x20] sm:$0xff]  ;;  %415 = vmatpush1.msra.mxu1 %v2846_v23  ;;  %575 = vmatpush1.msra.mxu0 %v2848_v24  ;;  %v2966_v61 = vld [vmem:[#allocation8 + $0x138] sm:$0xff] }
  0x77   : > { %3715 = vst [vmem:[#allocation22_spill] sm:$0xff] %v2853_v26  ;;  %3716 = vst [vmem:[#allocation23_spill] sm:$0xff] %v2858_v28  ;;  %v2862_v29 = vld [vmem:[#allocation8 + $0x108] sm:$0xff]  ;;  %416 = vmatprep.subr.mxu1 %v2851_v25  ;;  %576 = vmatprep.subr.mxu0 %v2853_v26  ;;  %v2868_v31 = vld [vmem:[#allocation8 + $0x100] sm:$0xff] }
  0x78   : > { %v2864_v30 = vld [vmem:[#allocation8 + $0x8] sm:$0xff]  ;;  %v2870_v32 = vld [vmem:[#allocation8] sm:$0xff]  ;;  %417 = vmatpush1.msra.mxu1 %v2856_v27  ;;  %577 = vmatpush1.msra.mxu0 %v2858_v28  ;;  %v2974_v63 = vld [vmem:[#allocation8 + $0x130] sm:$0xff] }
  0x79   : > { %3717 = vst [vmem:[#allocation24_spill] sm:$0xff] %v2864_v30  ;;  %3718 = vst [vmem:[#allocation25_spill] sm:$0xff] %v2870_v32  ;;  %v2875_v33 = vld [vmem:[%s2789_s11 + $0x1] sm:$0xff]  ;;  %418 = vmatprep.subr.mxu1 %v2862_v29  ;;  %578 = vmatprep.subr.mxu0 %v2864_v30  ;;  %v2953_v57 = vld [vmem:[%s2789_s11 + $0x9] sm:$0xff] }
  0x7a   : > { %v2882_v35 = vld [vmem:[%s2789_s11] sm:$0xff]  ;;  %v2884_v36 = vld [vmem:[#allocation8 + $0x2e8] sm:$0xff]  ;;  %419 = vmatpush1.msra.mxu1 %v2868_v31  ;;  %579 = vmatpush1.msra.mxu0 %v2870_v32  ;;  %v2986_v10 = vld [vmem:[#allocation8 + $0x110] sm:$0xff] }
  0x7b   : > { %3719 = vst [vmem:[#allocation26_spill] sm:$0xff] %v2884_v36  ;;  %v2890_v38 = vld [vmem:[#allocation8 + $0x2e0] sm:$0xff]  ;;  %2181 = vmatmul.mubr.msk.f32.vlgmr.msra.gmra.mxu1 %vm381_vm0, %v2875_v33  ;;  %481 = vmatprep.subr.mxu1 %v2877_v34  ;;  %v2897_v40 = vld [vmem:[#allocation8 + $0x2c8] sm:$0xff]  ;;  %v2980_v6 = vld [vmem:[#allocation8 + $0x118] sm:$0xff] }
  0x7c   : > { %3720 = vst [vmem:[#allocation27_spill] sm:$0xff] %v2890_v38  ;;  %3721 = vst [vmem:[#allocation28_spill] sm:$0xff] %v2897_v40  ;;  %2185 = vmatmul.mubr.msk.f32.vlgmr.msra.gmra.mxu0 %vm381_vm0, %v2882_v35  ;;  %758 = vmatprep.subr.mxu0 %v2884_v36  ;;  %v2904_v42 = vld [vmem:[#allocation8 + $0x2c0] sm:$0xff]  ;;  %v2910_v44 = vld [vmem:[#allocation8 + $0x2a8] sm:$0xff] }
  0x7d   : > { %3722 = vst [vmem:[#allocation29_spill] sm:$0xff] %v2904_v42  ;;  %482 = vmatpush1.msra.mxu1 %v2888_v37  ;;  %759 = vmatpush1.msra.mxu0 %v2890_v38  ;;  %3723 = vst [vmem:[#allocation30_spill] sm:$0xff] %v2910_v44  ;;  %v2916_v46 = vld [vmem:[#allocation8 + $0x2a0] sm:$0xff]  ;;  %v2922_v48 = vld [vmem:[#allocation8 + $0x288] sm:$0xff] }
  0x7e   : > { %483 = vmatprep.subr.mxu1 %v2895_v39  ;;  %760 = vmatprep.subr.mxu0 %v2897_v40  ;;  %3724 = vst [vmem:[#allocation31_spill] sm:$0xff] %v2916_v46  ;;  %3725 = vst [vmem:[#allocation32_spill] sm:$0xff] %v2922_v48  ;;  %v2928_v50 = vld [vmem:[#allocation8 + $0x280] sm:$0xff]  ;;  %v2934_v52 = vld [vmem:[#allocation8 + $0x268] sm:$0xff] }
  0x7f   : > { %484 = vmatpush1.msra.mxu1 %v2902_v41  ;;  %761 = vmatpush1.msra.mxu0 %v2904_v42  ;;  %3726 = vst [vmem:[#allocation33_spill] sm:$0xff] %v2928_v50  ;;  %3727 = vst [vmem:[#allocation34_spill] sm:$0xff] %v2934_v52  ;;  %v2940_v54 = vld [vmem:[#allocation8 + $0x260] sm:$0xff]  ;;  %v2948_v56 = vld [vmem:[#allocation8 + $0x248] sm:$0xff] }
  0x80   : > { %485 = vmatprep.subr.mxu1 %v2908_v43  ;;  %762 = vmatprep.subr.mxu0 %v2910_v44  ;;  %3728 = vst [vmem:[#allocation35_spill] sm:$0xff] %v2940_v54  ;;  %3729 = vst [vmem:[#allocation36_spill] sm:$0xff] %v2948_v56  ;;  %v2956_v58 = vld [vmem:[%s2789_s11 + $0x8] sm:$0xff]  ;;  %v2994_v14 = vld [vmem:[#allocation8 + $0xf8] sm:$0xff] }
  0x81   : > { %486 = vmatpush1.msra.mxu1 %v2914_v45  ;;  %763 = vmatpush1.msra.mxu0 %v2916_v46  ;;  %v2962_v60 = vld [vmem:[#allocation8 + $0x240] sm:$0xff]  ;;  %v2968_v62 = vld [vmem:[#allocation8 + $0x228] sm:$0xff]  ;;  %v3005_v20 = vld [vmem:[#allocation8 + $0xf0] sm:$0xff] }
  0x82   : > { %487 = vmatprep.subr.mxu1 %v2920_v47  ;;  %764 = vmatprep.subr.mxu0 %v2922_v48  ;;  %3730 = vst [vmem:[#allocation37_spill] sm:$0xff] %v2962_v60  ;;  %3731 = vst [vmem:[#allocation38_spill] sm:$0xff] %v2968_v62  ;;  %v2976_v4 = vld [vmem:[#allocation8 + $0x220] sm:$0xff]  ;;  %v2982_v8 = vld [vmem:[#allocation8 + $0x208] sm:$0xff] }
  0x83   : > { %488 = vmatpush1.msra.mxu1 %v2926_v49  ;;  %765 = vmatpush1.msra.mxu0 %v2928_v50  ;;  %3732 = vst [vmem:[#allocation39_spill] sm:$0xff] %v2976_v4  ;;  %3733 = vst [vmem:[#allocation40_spill] sm:$0xff] %v2982_v8  ;;  %v2990_v12 = vld [vmem:[#allocation8 + $0x200] sm:$0xff]  ;;  %v3001_v18 = vld [vmem:[#allocation8 + $0x3e8] sm:$0xff] }
  0x84   : > { %489 = vmatprep.subr.mxu1 %v2932_v51  ;;  %766 = vmatprep.subr.mxu0 %v2934_v52  ;;  %3734 = vst [vmem:[#allocation41_spill] sm:$0xff] %v2990_v12  ;;  %v2999_v16 = vld [vmem:[%s2789_s11 + $0x2] sm:$0xff]  ;;  %3735 = vst [vmem:[#allocation42_spill] sm:$0xff] %v3001_v18  ;;  %v3061_v46 = vld [vmem:[#allocation8 + $0x70] sm:$0xff] }
  0x85   : > { %490 = vmatpush1.msra.mxu1 %v2938_v53  ;;  %767 = vmatpush1.msra.mxu0 %v2940_v54  ;;  %v3007_v22 = vld [vmem:[#allocation8 + $0x3e0] sm:$0xff]  ;;  %v3044_v52 = vld [vmem:[#allocation8 + $0x388] sm:$0xff]  ;;  %v3094_v38 = vld [vmem:[#allocation8 + $0x18] sm:$0xff] }
  0x86   : > { %458 = vmatprep.mubr.f32.mxu1 %v3614_v0  ;;  %491 = vmatprep.subr.mxu1 %v2944_v55  ;;  %3736 = vst [vmem:[#allocation43_spill] sm:$0xff] %v3007_v22  ;;  %v3038_v54 = vld [vmem:[#allocation8 + $0x3a0] sm:$0xff]  ;;  %3742 = vst [vmem:[#allocation48_spill] sm:$0xff] %v3044_v52  ;;  %v3057_v48 = vld [vmem:[#allocation8 + $0x368] sm:$0xff] }
  0x87   : > { %618 = vmatprep.mubr.f32.mxu0 %v3614_v0  ;;  %768 = vmatprep.subr.mxu0 %v2948_v56  ;;  %v3036_v56 = vld [vmem:[#allocation8 + $0xb0] sm:$0xff]  ;;  %3741 = vst [vmem:[#allocation47_spill] sm:$0xff] %v3038_v54  ;;  %v3051_v50 = vld [vmem:[#allocation8 + $0x380] sm:$0xff]  ;;  %3744 = vst [vmem:[#allocation50_spill] sm:$0xff] %v3057_v48 }
  0x88   : > { %2182 = vmatmul.mubr.msk.f32.gmra.mxu1 %vm381_vm0, %v2953_v57  ;;  %2186 = vmatmul.mubr.msk.f32.gmra.mxu0 %vm381_vm0, %v2956_v58  ;;  %3743 = vst [vmem:[#allocation49_spill] sm:$0xff] %v3051_v50  ;;  %v3063_v44 = vld [vmem:[#allocation8 + $0x360] sm:$0xff]  ;;  %v3083_v40 = vld [vmem:[#allocation8 + $0x328] sm:$0xff]  ;;  %v3115_v32 = vld [vmem:[#allocation8 + $0x2f0] sm:$0xff] }
  0x89   : > { %492 = vmatpush1.msra.mxu1 %v2960_v59  ;;  %769 = vmatpush1.msra.mxu0 %v2962_v60  ;;  %v3032_v60 = vld [vmem:[#allocation8 + $0x3a8] sm:$0xff]  ;;  %3745 = vst [vmem:[#allocation51_spill] sm:$0xff] %v3063_v44  ;;  %v3077_v42 = vld [vmem:[#allocation8 + $0x340] sm:$0xff]  ;;  %3748 = vst [vmem:[#allocation54_spill] sm:$0xff] %v3083_v40 }
  0x8a   : > { %493 = vmatprep.subr.mxu1 %v2966_v61  ;;  %770 = vmatprep.subr.mxu0 %v2968_v62  ;;  %v3030_v62 = vld [vmem:[%s2789_s11 + $0xa] sm:$0xff]  ;;  %3739 = vst [vmem:[#allocation46_spill] sm:$0xff] %v3032_v60  ;;  %3747 = vst [vmem:[#allocation53_spill] sm:$0xff] %v3077_v42  ;;  %v3129_v30 = vld [vmem:[#allocation8 + $0x2b8] sm:$0xff] }
  0x8b   : > { %494 = vmatpush1.msra.mxu1 %v2974_v63  ;;  %771 = vmatpush1.msra.mxu0 %v2976_v4  ;;  %v3014_v4 = vld [vmem:[#allocation8 + $0x3c8] sm:$0xff]  ;;  %3753 = vst [vmem:[#allocation59_spill] sm:$0xff] %v3129_v30  ;;  %v3136_v28 = vld [vmem:[#allocation8 + $0x2b0] sm:$0xff]  ;;  %v3150_v24 = vld [vmem:[#allocation8 + $0x278] sm:$0xff] }
  0x8c   : > { %495 = vmatprep.subr.mxu1 %v2980_v6  ;;  %772 = vmatprep.subr.mxu0 %v2982_v8  ;;  %v3012_v8 = vld [vmem:[#allocation8 + $0xd8] sm:$0xff]  ;;  %3737 = vst [vmem:[#allocation44_spill] sm:$0xff] %v3014_v4  ;;  %v3096_v36 = vld [vmem:[#allocation8 + $0x308] sm:$0xff]  ;;  %3754 = vst [vmem:[#allocation60_spill] sm:$0xff] %v3136_v28 }
  0x8d   : > { %496 = vmatpush1.msra.mxu1 %v2986_v10  ;;  %529 = vmatprep.mubr.f32.mxu1 %v3614_v0  ;;  %3750 = vst [vmem:[#allocation56_spill] sm:$0xff] %v3096_v36  ;;  %v3145_v26 = vld [vmem:[#allocation8 + $0x290] sm:$0xff]  ;;  %3757 = vst [vmem:[#allocation63_spill] sm:$0xff] %v3150_v24 }
  0x8e   : > { %773 = vmatpush1.msra.mxu0 %v2990_v12  ;;  %806 = vmatprep.mubr.f32.mxu0 %v3614_v0  ;;  %v3019_v0 = vld [vmem:[#allocation8 + $0xd0] sm:$0xff]  ;;  %v3023_v12 = vld [vmem:[#allocation8 + $0x3c0] sm:$0xff]  ;;  %3756 = vst [vmem:[#allocation62_spill] sm:$0xff] %v3145_v26 }
  0x8f   : > { %2183 = vmatmul.mubr.msk.f32.vlgmr.msra.gmra.mxu1 %vm381_vm0, %v2875_v33  ;;  %641 = vmatprep.subr.mxu1 %v2994_v14  ;;  %3738 = vst [vmem:[#allocation45_spill] sm:$0xff] %v3023_v12  ;;  %v3025_v33 = vld [vmem:[#allocation8 + $0xb8] sm:$0xff]  ;;  %v3153_v2 = vld [vmem:[#allocation8 + $0x270] sm:$0xff] }
  0x90   : > { %2189 = vmatmul.mubr.msk.f32.vlgmr.msra.gmra.mxu0 %vm381_vm0, %v2999_v16  ;;  %960 = vmatprep.subr.mxu0 %v3001_v18  ;;  %v3740_v18 = vmov 0.0   ;;  %3758 = vst [vmem:[#allocation64_spill] sm:$0xff] %v3153_v2 }
  0x91   : > { %642 = vmatpush1.msra.mxu1 %v3005_v20  ;;  %961 = vmatpush1.msra.mxu0 %v3007_v22  ;;  %v3042_v22 = vld [vmem:[#allocation8 + $0x98] sm:$0xff] }
  0x92   : > { %643 = vmatprep.subr.mxu1 %v3012_v8  ;;  %962 = vmatprep.subr.mxu0 %v3014_v4  ;;  %v3049_v4 = vld [vmem:[#allocation8 + $0x90] sm:$0xff] }
  0x93   : > { %644 = vmatpush1.msra.mxu1 %v3019_v0  ;;  %812 = vmatprep.mubr.f32.mxu0 %v3740_v18 }
  0x94   : > { %963 = vmatpush1.msra.mxu0 %v3023_v12  ;;  %645 = vmatprep.subr.mxu1 %v3025_v33  ;;  %v3055_v12 = vld [vmem:[#allocation8 + $0x78] sm:$0xff] }
  0x95   : > { %2190 = vmatmul.mubr.msk.f32.gmra.mxu0 %vm381_vm0, %v3030_v62  ;;  %964 = vmatprep.subr.mxu0 %v3032_v60  ;;  %v3067_v60 = vld [vmem:[#allocation8 + $0x58] sm:$0xff] }
  0x96   : > { %646 = vmatpush1.msra.mxu1 %v3036_v56  ;;  %965 = vmatpush1.msra.mxu0 %v3038_v54  ;;  %v3071_v54 = vld [vmem:[#allocation8 + $0x348] sm:$0xff] }
  0x97   : > { %647 = vmatprep.subr.mxu1 %v3042_v22  ;;  %966 = vmatprep.subr.mxu0 %v3044_v52  ;;  %3746 = vst [vmem:[#allocation52_spill] sm:$0xff] %v3071_v54  ;;  %v3075_v52 = vld [vmem:[#allocation8 + $0x50] sm:$0xff] }
  0x98   : > { %648 = vmatpush1.msra.mxu1 %v3049_v4  ;;  %967 = vmatpush1.msra.mxu0 %v3051_v50  ;;  %v3081_v50 = vld [vmem:[#allocation8 + $0x38] sm:$0xff] }
  0x99   : > { %649 = vmatprep.subr.mxu1 %v3055_v12  ;;  %968 = vmatprep.subr.mxu0 %v3057_v48  ;;  %v3088_v48 = vld [vmem:[#allocation8 + $0x30] sm:$0xff] }
  0x9a   : > { %650 = vmatpush1.msra.mxu1 %v3061_v46  ;;  %969 = vmatpush1.msra.mxu0 %v3063_v44  ;;  %v3090_v44 = vld [vmem:[#allocation8 + $0x320] sm:$0xff] }
  0x9b   : > { %535 = vmatprep.mubr.f32.mxu1 %v3740_v18  ;;  %651 = vmatprep.subr.mxu1 %v3067_v60  ;;  %3749 = vst [vmem:[#allocation55_spill] sm:$0xff] %v3090_v44 }
  0x9c   : > { %970 = vmatprep.subr.mxu0 %v3071_v54  ;;  %2184 = vmatmul.mubr.msk.f32.gmra.mxu1 %vm381_vm0, %v2953_v57  ;;  %v3100_v54 = vld [vmem:[#allocation8 + $0x10] sm:$0xff]  ;;  %v3104_v57 = vld [vmem:[#allocation8 + $0x300] sm:$0xff] }
  0x9d   : > { %652 = vmatpush1.msra.mxu1 %v3075_v52  ;;  %971 = vmatpush1.msra.mxu0 %v3077_v42  ;;  %3751 = vst [vmem:[#allocation57_spill] sm:$0xff] %v3104_v57  ;;  %v3108_v42 = vld [vmem:[#allocation8 + $0x2f8] sm:$0xff] }
  0x9e   : > { %653 = vmatprep.subr.mxu1 %v3081_v50  ;;  %972 = vmatprep.subr.mxu0 %v3083_v40  ;;  %v3113_v40 = vld [vmem:[%s2789_s11 + $0x3] sm:$0xff] }
  0x9f   : > { %654 = vmatpush1.msra.mxu1 %v3088_v48  ;;  %973 = vmatpush1.msra.mxu0 %v3090_v44  ;;  %v3119_v44 = vld [vmem:[#allocation8 + $0x2d8] sm:$0xff] }
  0xa0   : > { %655 = vmatprep.subr.mxu1 %v3094_v38  ;;  %974 = vmatprep.subr.mxu0 %v3096_v36  ;;  %v3124_v36 = vld [vmem:[#allocation8 + $0x2d0] sm:$0xff] }
  0xa1   : > { %656 = vmatpush1.msra.mxu1 %v3100_v54  ;;  %689 = vmatprep.mubr.f32.mxu1 %v3740_v18  ;;  %3752 = vst [vmem:[#allocation58_spill] sm:$0xff] %v3124_v36 }
  0xa2   : > { %975 = vmatpush1.msra.mxu0 %v3104_v57  ;;  %1008 = vmatprep.mubr.f32.mxu0 %v3740_v18  ;;  %v3134_v57 = vld [vmem:[%s2789_s11 + $0xb] sm:$0xff] }
  0xa3   : > { %2187 = vmatmul.mubr.msk.f32.vlgmr.msra.gmra.mxu1 %vm381_vm0, %v2882_v35  ;;  %835 = vmatprep.subr.mxu1 %v3108_v42  ;;  %v3140_v35 = vld [vmem:[#allocation8 + $0x298] sm:$0xff] }
  0xa4   : > { %2193 = vmatmul.mubr.msk.f32.vlgmr.msra.gmra.mxu0 %vm381_vm0, %v3113_v40  ;;  %836 = vmatpush1.msra.mxu1 %v3115_v32  ;;  %3755 = vst [vmem:[#allocation61_spill] sm:$0xff] %v3140_v35 }
  0xa5   : > { %837 = vmatprep.subr.mxu1 %v3119_v44  ;;  %695 = vmatprep.mubr.f32.mxu1 %v3740_v18 }
  0xa6   : > { %838 = vmatpush1.msra.mxu1 %v3124_v36  ;;  %1014 = vmatprep.mubr.f32.mxu0 %v3740_v18  ;;  %v3163_v36 = vld [vmem:[#allocation8 + $0x238] sm:$0xff] }
  0xa7   : > { %2188 = vmatmul.mubr.msk.f32.gmra.mxu1 %vm381_vm0, %v2956_v58  ;;  %839 = vmatprep.subr.mxu1 %v3129_v30  ;;  %v3157_v58 = vld [vmem:[#allocation8 + $0x258] sm:$0xff]  ;;  %v3160_v30 = vld [vmem:[#allocation8 + $0x250] sm:$0xff]  ;;  %3760 = vst [vmem:[#allocation66_spill] sm:$0xff] %v3163_v36 }
  0xa8   : > { %2194 = vmatmul.mubr.msk.f32.gmra.mxu0 %vm381_vm0, %v3134_v57  ;;  %840 = vmatpush1.msra.mxu1 %v3136_v28  ;;  %3759 = vst [vmem:[#allocation65_spill] sm:$0xff] %v3157_v58  ;;  %v3166_v28 = vld [vmem:[#allocation8 + $0x230] sm:$0xff] }
  0xa9   : > { %841 = vmatprep.subr.mxu1 %v3140_v35  ;;  %883 = vmatprep.mubr.f32.mxu1 %v3740_v18  ;;  %3761 = vst [vmem:[#allocation67_spill] sm:$0xff] %v3166_v28  ;;  %v3169_v35 = vld [vmem:[#allocation8 + $0x218] sm:$0xff] }
  0xaa   : > { %842 = vmatpush1.msra.mxu1 %v3145_v26  ;;  %3762 = vst [vmem:[#allocation68_spill] sm:$0xff] %v3169_v35  ;;  %v3172_v26 = vld [vmem:[#allocation8 + $0x210] sm:$0xff] }
  0xab   : > { %843 = vmatprep.subr.mxu1 %v3150_v24  ;;  %3763 = vst [vmem:[#allocation69_spill] sm:$0xff] %v3172_v26  ;;  %v3175_v24 = vld [vmem:[#allocation8 + $0x3f8] sm:$0xff] }
  0xac   : > { %844 = vmatpush1.msra.mxu1 %v3153_v2  ;;  %v3178_v2 = vld [vmem:[#allocation8 + $0x3f0] sm:$0xff] }
  0xad   : > { %845 = vmatprep.subr.mxu1 %v3157_v58  ;;  %3764 = vst [vmem:[#allocation70_spill] sm:$0xff] %v3178_v2  ;;  %v3181_v58 = vld [vmem:[#allocation8 + $0x3d8] sm:$0xff] }
  0xae   : > { %846 = vmatpush1.msra.mxu1 %v3160_v30  ;;  %3765 = vst [vmem:[#allocation71_spill] sm:$0xff] %v3181_v58 }
  0xaf   : > { %847 = vmatprep.subr.mxu1 %v3163_v36  ;;  %v3186_v36 = vld [vmem:[#allocation8 + $0x3d0] sm:$0xff] }
  0xb0   : > { %848 = vmatpush1.msra.mxu1 %v3166_v28  ;;  %3766 = vst [vmem:[#allocation72_spill] sm:$0xff] %v3186_v36  ;;  %v3190_v28 = vld [vmem:[#allocation8 + $0x3b8] sm:$0xff] }
  0xb1   : > { %849 = vmatprep.subr.mxu1 %v3169_v35  ;;  %3767 = vst [vmem:[#allocation73_spill] sm:$0xff] %v3190_v28  ;;  %v3193_v35 = vld [vmem:[#allocation8 + $0x3b0] sm:$0xff] }
  0xb2   : > { %850 = vmatpush1.msra.mxu1 %v3172_v26  ;;  %3768 = vst [vmem:[#allocation74_spill] sm:$0xff] %v3193_v35  ;;  %v3196_v26 = vld [vmem:[#allocation8 + $0x398] sm:$0xff] }
  0xb3   : > { %2191 = vmatmul.mubr.msk.f32.vlgmr.msra.gmra.mxu1 %vm381_vm0, %v2999_v16  ;;  %1037 = vmatprep.subr.mxu1 %v3175_v24  ;;  %3769 = vst [vmem:[#allocation75_spill] sm:$0xff] %v3196_v26  ;;  %v3201_v16 = vld [vmem:[#allocation8 + $0x390] sm:$0xff] }
  0xb4   : > { %1038 = vmatpush1.msra.mxu1 %v3178_v2  ;;  %889 = vmatprep.mubr.f32.mxu1 %v3740_v18  ;;  %3770 = vst [vmem:[#allocation76_spill] sm:$0xff] %v3201_v16  ;;  %v3204_v2 = vld [vmem:[#allocation8 + $0x378] sm:$0xff] }
  0xb5   : > { %1039 = vmatprep.subr.mxu1 %v3181_v58  ;;  %v3208_v58 = vld [vmem:[#allocation8 + $0x370] sm:$0xff] }
  0xb6   : > { %1040 = vmatpush1.msra.mxu1 %v3186_v36  ;;  %v3211_v36 = vld [vmem:[#allocation8 + $0x358] sm:$0xff] }
  0xb7   : > { %2192 = vmatmul.mubr.msk.f32.gmra.mxu1 %vm381_vm0, %v3030_v62  ;;  %1041 = vmatprep.subr.mxu1 %v3190_v28  ;;  %v3214_v62 = vld [vmem:[#allocation8 + $0x350] sm:$0xff]  ;;  %v3217_v28 = vld [vmem:[#allocation8 + $0x338] sm:$0xff] }
  0xb8   : > { %1042 = vmatpush1.msra.mxu1 %v3193_v35  ;;  %1085 = vmatprep.mubr.f32.mxu1 %v3740_v18  ;;  %v3220_v35 = vld [vmem:[#allocation8 + $0x330] sm:$0xff] }
  0xb9   : > { %1043 = vmatprep.subr.mxu1 %v3196_v26  ;;  %v3223_v26 = vld [vmem:[#allocation8 + $0x318] sm:$0xff] }
  0xba   : > { %1044 = vmatpush1.msra.mxu1 %v3201_v16  ;;  %v3226_v16 = vld [vmem:[#allocation8 + $0x310] sm:$0xff] }
  0xbb   : > { %1045 = vmatprep.subr.mxu1 %v3204_v2 }
  0xbc   : > { %1046 = vmatpush1.msra.mxu1 %v3208_v58 }
  0xbd   : > { %1047 = vmatprep.subr.mxu1 %v3211_v36 }
  0xbe   : > { %1048 = vmatpush1.msra.mxu1 %v3214_v62 }
  0xbf   : > { %1049 = vmatprep.subr.mxu1 %v3217_v28 }
  0xc0   : > { %1050 = vmatpush1.msra.mxu1 %v3220_v35 }
  0xc1   : > { %1051 = vmatprep.subr.mxu1 %v3223_v26 }
  0xc2   : > { %1052 = vmatpush1.msra.mxu1 %v3226_v16 }
  0xc3   : > { %2195 = vmatmul.mubr.msk.f32.vlgmr.msra.gmra.mxu1 %vm381_vm0, %v3113_v40  ;;  %1257 = vmatprep.subr.mxu1 %v2812_v1  ;;  %v1233_v1 = vld [vmem:[%s2796_s30 + $0x1] sm:$0xff]  ;;  %v3349_v40 = vld [vmem:[#allocation9 + $0xc0] sm:$0xff] }
  0xc4   : > { %1091 = vmatprep.mubr.f32.mxu1 %v3740_v18  ;;  %1258 = vmatpush1.msra.mxu1 %v2816_v3  ;;  %v1234_v3 = vld [vmem:[%s2796_s30 + $0x9] sm:$0xff] }
  0xc5   : > { %1259 = vmatprep.subr.mxu1 %v2820_v5  ;;  %v3289_v5 = vld [vmem:[#allocation9 + $0xf8] sm:$0xff] }
  0xc6   : > { %1260 = vmatpush1.msra.mxu1 %v2823_v7  ;;  %2219 = vmatprep.subr.mxu0 %v3289_v5  ;;  %v3295_v7 = vld [vmem:[#allocation9 + $0xf0] sm:$0xff] }
  0xc7   : > { %2196 = vmatmul.mubr.msk.f32.gmra.mxu1 %vm381_vm0, %v3134_v57  ;;  %1261 = vmatprep.subr.mxu1 %v2825_v9  ;;  %v3297_v9 = vld [vmem:[#allocation9 + $0x70] sm:$0xff] }
  0xc8   : > { %1262 = vmatpush1.msra.mxu1 %v2828_v11  ;;  %1305 = vmatprep.mubr.f32.mxu1 %v3740_v18  ;;  %v3301_v11 = vld [vmem:[#allocation9 + $0xe8] sm:$0xff]  ;;  %v3808_v57 = vld [vmem:[#allocation76_spill] sm:$0xff] }
  0xc9   : > { %1263 = vmatprep.subr.mxu1 %v2831_v13  ;;  %v3305_v13 = vld [vmem:[#allocation9 + $0x68] sm:$0xff] }
  0xca   : > { %1264 = vmatpush1.msra.mxu1 %v2834_v15  ;;  %v3310_v15 = vld [vmem:[%s2796_s30] sm:$0xff] }
  0xcb   : > { %1265 = vmatprep.subr.mxu1 %v2837_v17  ;;  %v3314_v17 = vld [vmem:[#allocation9 + $0xe0] sm:$0xff] }
  0xcc   : > { %1266 = vmatpush1.msra.mxu1 %v2840_v19  ;;  %v3321_v19 = vld [vmem:[#allocation9 + $0x60] sm:$0xff] }
  0xcd   : > { %1267 = vmatprep.subr.mxu1 %v2843_v21  ;;  %v3325_v21 = vld [vmem:[#allocation9 + $0xd8] sm:$0xff] }
  0xce   : > { %1268 = vmatpush1.msra.mxu1 %v2846_v23  ;;  %v3329_v23 = vld [vmem:[#allocation9 + $0x58] sm:$0xff] }
  0xcf   : > { %1269 = vmatprep.subr.mxu1 %v2851_v25  ;;  %v3771_v25 = vld [vmem:[#allocation58_spill] sm:$0xff] }
  0xd0   : > { %1270 = vmatpush1.msra.mxu1 %v2856_v27  ;;  %v3333_v27 = vld [vmem:[#allocation9 + $0xd0] sm:$0xff] }
  0xd1   : > { %1271 = vmatprep.subr.mxu1 %v2862_v29  ;;  %v3772_v29 = vld [vmem:[#allocation59_spill] sm:$0xff] }
  0xd2   : > { %1272 = vmatpush1.msra.mxu1 %v2868_v31  ;;  %v3337_v31 = vld [vmem:[#allocation9 + $0x50] sm:$0xff] }
  0xd3   : > { %1334 = vmatprep.subr.mxu1 %v2877_v34  ;;  %2197 = vmatmul.mubr.msk.f32.vlgmr.msra.gmra.mxu1 %vm381_vm0, %v1233_v1  ;;  %v3341_v34 = vld [vmem:[#allocation9 + $0xc8] sm:$0xff] }
  0xd4   : > { %1335 = vmatpush1.msra.mxu1 %v2888_v37  ;;  %1311 = vmatprep.mubr.f32.mxu1 %v3740_v18  ;;  %3774 = vst [vmem:[#allocation58_spill] sm:$0xff] %v3341_v34  ;;  %v3775_v37 = vld [vmem:[#allocation61_spill] sm:$0xff] }
  0xd5   : > { %1336 = vmatprep.subr.mxu1 %v2895_v39  ;;  %v3777_v39 = vld [vmem:[#allocation62_spill] sm:$0xff] }
  0xd6   : > { %1337 = vmatpush1.msra.mxu1 %v2902_v41  ;;  %v3351_v41 = vld [vmem:[#allocation9 + $0x40] sm:$0xff] }
  0xd7   : > { %1338 = vmatprep.subr.mxu1 %v2908_v43  ;;  %2198 = vmatmul.mubr.msk.f32.gmra.mxu1 %vm381_vm0, %v1234_v3  ;;  %3779 = vst [vmem:[#allocation61_spill] sm:$0xff] %v3351_v41  ;;  %v3781_v43 = vld [vmem:[#allocation64_spill] sm:$0xff] }
  0xd8   : > { %1339 = vmatpush1.msra.mxu1 %v2914_v45  ;;  %1382 = vmatprep.mubr.f32.mxu1 %v3740_v18  ;;  %v3783_v45 = vld [vmem:[#allocation65_spill] sm:$0xff] }
  0xd9   : > { %1340 = vmatprep.subr.mxu1 %v2920_v47  ;;  %v3364_v47 = vld [vmem:[#allocation9 + $0x38] sm:$0xff] }
  0xda   : > { %1341 = vmatpush1.msra.mxu1 %v2926_v49  ;;  %v3786_v49 = vld [vmem:[#allocation66_spill] sm:$0xff] }
  0xdb   : > { %1342 = vmatprep.subr.mxu1 %v2932_v51  ;;  %v3788_v51 = vld [vmem:[#allocation67_spill] sm:$0xff] }
  0xdc   : > { %1343 = vmatpush1.msra.mxu1 %v2938_v53  ;;  %v3384_v53 = vld [vmem:[%s2796_s30 + $0x2] sm:$0xff] }
  0xdd   : > { %1344 = vmatprep.subr.mxu1 %v2944_v55  ;;  %v3792_v55 = vld [vmem:[#allocation69_spill] sm:$0xff] }
  0xde   : > { %1345 = vmatpush1.msra.mxu1 %v2960_v59  ;;  %v3394_v59 = vld [vmem:[#allocation9 + $0x20] sm:$0xff] }
  0xdf   : > { %1346 = vmatprep.subr.mxu1 %v2966_v61  ;;  %3794 = vst [vmem:[#allocation69_spill] sm:$0xff] %v3394_v59  ;;  %v3796_v61 = vld [vmem:[#allocation70_spill] sm:$0xff] }
  0xe0   : > { %1347 = vmatpush1.msra.mxu1 %v2974_v63  ;;  %v3403_v63 = vld [vmem:[#allocation9 + $0x18] sm:$0xff] }
  0xe1   : > { %1348 = vmatprep.subr.mxu1 %v2980_v6  ;;  %3797 = vst [vmem:[#allocation70_spill] sm:$0xff] %v3403_v63  ;;  %v3800_v6 = vld [vmem:[#allocation72_spill] sm:$0xff] }
  0xe2   : > { %1349 = vmatpush1.msra.mxu1 %v2986_v10  ;;  %v3802_v10 = vld [vmem:[#allocation73_spill] sm:$0xff] }
  0xe3   : > { %1494 = vmatprep.subr.mxu1 %v2994_v14  ;;  %2199 = vmatmul.mubr.msk.f32.vlgmr.msra.gmra.mxu1 %vm381_vm0, %v1233_v1  ;;  %v3804_v14 = vld [vmem:[#allocation74_spill] sm:$0xff] }
  0xe4   : > { %1495 = vmatpush1.msra.mxu1 %v3005_v20  ;;  %1388 = vmatprep.mubr.f32.mxu1 %v3740_v18  ;;  %v3419_v20 = vld [vmem:[#allocation9 + $0x8] sm:$0xff]  ;;  %v3429_v1 = vld [vmem:[#allocation9] sm:$0xff] }
  0xe5   : > { %1496 = vmatprep.subr.mxu1 %v3012_v8  ;;  %v3411_v8 = vld [vmem:[#allocation9 + $0x10] sm:$0xff]  ;;  %3805 = vst [vmem:[#allocation74_spill] sm:$0xff] %v3419_v20  ;;  %3809 = vst [vmem:[#allocation76_spill] sm:$0xff] %v3429_v1 }
  0xe6   : > { %1497 = vmatpush1.msra.mxu1 %v3019_v0  ;;  %v3293_v0 = vld [vmem:[#allocation9 + $0x78] sm:$0xff]  ;;  %3801 = vst [vmem:[#allocation72_spill] sm:$0xff] %v3411_v8 }
  0xe7   : > { %1498 = vmatprep.subr.mxu1 %v3025_v33  ;;  %2200 = vmatmul.mubr.msk.f32.gmra.mxu1 %vm381_vm0, %v1234_v3  ;;  %v3423_v33 = vld [vmem:[#allocation9 + $0x80] sm:$0xff] }
  0xe8   : > { %1499 = vmatpush1.msra.mxu1 %v3036_v56  ;;  %1542 = vmatprep.mubr.f32.mxu1 %v3740_v18  ;;  %v3390_v56 = vld [vmem:[#allocation9 + $0xa0] sm:$0xff] }
  0xe9   : > { %1500 = vmatprep.subr.mxu1 %v3042_v22  ;;  %2220 = vmatpush3.msra.mxu0 %v3293_v0  ;;  %v3806_v22 = vld [vmem:[#allocation75_spill] sm:$0xff]  ;;  %v3434_v3 = vld [vmem:[%s2796_s30 + $0xa] sm:$0xff] }
  0xea   : > { %1501 = vmatpush1.msra.mxu1 %v3049_v4  ;;  %2221 = vmatprep.subr.mxu0 %v3295_v7  ;;  %v3798_v4 = vld [vmem:[#allocation71_spill] sm:$0xff]  ;;  %3807 = vst [vmem:[#allocation75_spill] sm:$0xff] %v3423_v33 }
  0xeb   : > { %1502 = vmatprep.subr.mxu1 %v3055_v12  ;;  %2222 = vmatpush3.msra.mxu0 %v3297_v9  ;;  %v3415_v12 = vld [vmem:[#allocation9 + $0x88] sm:$0xff] }
  0xec   : > { %1503 = vmatpush1.msra.mxu1 %v3061_v46  ;;  %2223 = vmatprep.subr.mxu0 %v3301_v11  ;;  %v3362_v46 = vld [vmem:[%s2796_s30 + $0x8] sm:$0xff]  ;;  %3803 = vst [vmem:[#allocation73_spill] sm:$0xff] %v3415_v12 }
  0xed   : > { %1504 = vmatprep.subr.mxu1 %v3067_v60  ;;  %2224 = vmatpush3.msra.mxu0 %v3305_v13  ;;  %v3399_v60 = vld [vmem:[#allocation9 + $0x98] sm:$0xff] }
  0xee   : > { %1505 = vmatpush1.msra.mxu1 %v3075_v52  ;;  %2225 = vmatprep.subr.mxu0 %v3314_v17  ;;  %v3790_v52 = vld [vmem:[#allocation68_spill] sm:$0xff]  ;;  %3795 = vst [vmem:[#allocation77_spill] sm:$0xff] %v3399_v60 }
  0xef   : > { %1506 = vmatprep.subr.mxu1 %v3081_v50  ;;  %2226 = vmatpush3.msra.mxu0 %v3321_v19  ;;  %v3372_v50 = vld [vmem:[#allocation9 + $0x30] sm:$0xff]  ;;  %3793 = vst [vmem:[#allocation68_spill] sm:$0xff] %v3390_v56 }
  0xf0   : > { %1507 = vmatpush1.msra.mxu1 %v3088_v48  ;;  %2227 = vmatprep.subr.mxu0 %v3325_v21  ;;  %v3368_v48 = vld [vmem:[#allocation9 + $0xb0] sm:$0xff]  ;;  %3787 = vst [vmem:[#allocation65_spill] sm:$0xff] %v3372_v50 }
  0xf1   : > { %1508 = vmatprep.subr.mxu1 %v3094_v38  ;;  %2228 = vmatpush3.msra.mxu0 %v3329_v23  ;;  %v3345_v38 = vld [vmem:[#allocation9 + $0x48] sm:$0xff]  ;;  %3785 = vst [vmem:[#allocation64_spill] sm:$0xff] %v3368_v48 }
  0xf2   : > { %1509 = vmatpush1.msra.mxu1 %v3100_v54  ;;  %2229 = vmatprep.subr.mxu0 %v3333_v27  ;;  %3776 = vst [vmem:[#allocation59_spill] sm:$0xff] %v3345_v38  ;;  %v3386_v54 = vld [vmem:[#allocation9 + $0x28] sm:$0xff] }
  0xf3   : > { %1656 = vmatprep.subr.mxu1 %v3108_v42  ;;  %2203 = vmatmul.mubr.msk.f32.vlgmr.msra.gmra.mxu1 %vm381_vm0, %v3310_v15  ;;  %v3780_v42 = vld [vmem:[#allocation63_spill] sm:$0xff]  ;;  %3791 = vst [vmem:[#allocation67_spill] sm:$0xff] %v3386_v54 }
  0xf4   : > { %1657 = vmatpush1.msra.mxu1 %v3115_v32  ;;  %v3773_v32 = vld [vmem:[#allocation60_spill] sm:$0xff]  ;;  %2230 = vmatpush3.msra.mxu0 %v3337_v31  ;;  %3784 = vst [vmem:[#allocation63_spill] sm:$0xff] %v3364_v47 }
  0xf5   : > { %1658 = vmatprep.subr.mxu1 %v3119_v44  ;;  %2231 = vmatprep.subr.mxu0 %v3341_v34  ;;  %3778 = vst [vmem:[#allocation60_spill] sm:$0xff] %v3349_v40  ;;  %v3357_v44 = vld [vmem:[#allocation9 + $0xb8] sm:$0xff] }
  0xf6   : > { %1659 = vmatpush1.msra.mxu1 %v3771_v25  ;;  %2232 = vmatpush3.msra.mxu0 %v3345_v38  ;;  %3782 = vst [vmem:[#allocation62_spill] sm:$0xff] %v3357_v44 }
  0xf7   : > { %1660 = vmatprep.subr.mxu1 %v3772_v29  ;;  %2233 = vmatprep.subr.mxu0 %v3349_v40 }
  0xf8   : > { %1661 = vmatpush1.msra.mxu1 %v3773_v32  ;;  %2234 = vmatpush3.msra.mxu0 %v3351_v41 }
  0xf9   : > { %1662 = vmatprep.subr.mxu1 %v3775_v37  ;;  %1548 = vmatprep.mubr.f32.mxu1 %v3740_v18 }
  0xfa   : > { %1663 = vmatpush1.msra.mxu1 %v3777_v39  ;;  %2235 = vmatprep.subr.mxu0 %v3357_v44 }
  0xfb   : > { %1664 = vmatprep.subr.mxu1 %v3780_v42  ;;  %2204 = vmatmul.mubr.msk.f32.gmra.mxu1 %vm381_vm0, %v3362_v46 }
  0xfc   : > { %1665 = vmatpush1.msra.mxu1 %v3781_v43  ;;  %2236 = vmatpush3.msra.mxu0 %v3364_v47 }
  0xfd   : > { %1666 = vmatprep.subr.mxu1 %v3783_v45  ;;  %2237 = vmatprep.subr.mxu0 %v3368_v48 }
  0xfe   : > { %1667 = vmatpush1.msra.mxu1 %v3160_v30  ;;  %v3379_v30 = vld [vmem:[#allocation9 + $0xa8] sm:$0xff]  ;;  %2238 = vmatpush3.msra.mxu0 %v3372_v50 }
  0xff   : > { %1668 = vmatprep.subr.mxu1 %v3786_v49  ;;  %3789 = vst [vmem:[#allocation66_spill] sm:$0xff] %v3379_v30  ;;  %1704 = vmatprep.mubr.f32.mxu1 %v3740_v18 }
 0x100   : > { %1669 = vmatpush1.msra.mxu1 %v3788_v51  ;;  %2239 = vmatprep.subr.mxu0 %v3379_v30 }
 0x101   : > { %1670 = vmatprep.subr.mxu1 %v3790_v52  ;;  %2240 = vmatpush3.msra.mxu0 %v3386_v54 }
 0x102   : > { %1671 = vmatpush1.msra.mxu1 %v3792_v55  ;;  %2241 = vmatprep.subr.mxu0 %v3390_v56 }
 0x103   : > { %1826 = vmatprep.subr.mxu1 %v3175_v24  ;;  %2207 = vmatmul.mubr.msk.f32.vlgmr.msra.gmra.mxu1 %vm381_vm0, %v3384_v53  ;;  %v3407_v24 = vld [vmem:[#allocation9 + $0x90] sm:$0xff] }
 0x104   : > { %1827 = vmatpush1.msra.mxu1 %v3796_v61  ;;  %2242 = vmatpush3.msra.mxu0 %v3394_v59  ;;  %3799 = vst [vmem:[#allocation71_spill] sm:$0xff] %v3407_v24 }
 0x105   : > { %1828 = vmatprep.subr.mxu1 %v3798_v4  ;;  %2243 = vmatprep.subr.mxu0 %v3399_v60 }
 0x106   : > { %1829 = vmatpush1.msra.mxu1 %v3800_v6  ;;  %2244 = vmatpush3.msra.mxu0 %v3403_v63 }
 0x107   : > { %1830 = vmatprep.subr.mxu1 %v3802_v10  ;;  %2245 = vmatprep.subr.mxu0 %v3407_v24 }
 0x108   : > { %1831 = vmatpush1.msra.mxu1 %v3804_v14  ;;  %2246 = vmatpush3.msra.mxu0 %v3411_v8 }
 0x109   : > { %1832 = vmatprep.subr.mxu1 %v3806_v22  ;;  %2247 = vmatprep.subr.mxu0 %v3415_v12 }
 0x10a   : > { %1833 = vmatpush1.msra.mxu1 %v3808_v57  ;;  %2248 = vmatpush3.msra.mxu0 %v3419_v20 }
 0x10b   : > { %1834 = vmatprep.subr.mxu1 %v3204_v2  ;;  %2249 = vmatprep.subr.mxu0 %v3423_v33  ;;  %v3810_v2 = vld [vmem:[#allocation20_spill] sm:$0xff] }
 0x10c   : > { %1835 = vmatpush1.msra.mxu1 %v3208_v58  ;;  %1710 = vmatprep.mubr.f32.mxu1 %v3740_v18  ;;  %v3446_v58 = vld [vmem:[%s2796_s30 + $0x3] sm:$0xff] }
 0x10d   : > { %1836 = vmatprep.subr.mxu1 %v3211_v36  ;;  %2250 = vmatpush3.msra.mxu0 %v3429_v1  ;;  %v3455_v36 = vld [vmem:[%s2796_s30 + $0xb] sm:$0xff] }
 0x10e   : > { %1837 = vmatpush1.msra.mxu1 %v3214_v62  ;;  %1417 = vmatprep.subr.mxu0 %v3810_v2 }
 0x10f   : > { %2208 = vmatmul.mubr.msk.f32.gmra.mxu1 %vm381_vm0, %v3434_v3  ;;  %1838 = vmatprep.subr.mxu1 %v3217_v28 }
 0x110   : > { %1839 = vmatpush1.msra.mxu1 %v3220_v35  ;;  %1874 = vmatprep.mubr.f32.mxu1 %v3740_v18 }
 0x111   : > { %1840 = vmatprep.subr.mxu1 %v3223_v26 }
 0x112   : > { %1841 = vmatpush1.msra.mxu1 %v3226_v16 }
 0x113   : > { %2211 = vmatmul.mubr.msk.f32.vlgmr.msra.gmra.mxu1 %vm381_vm0, %v3446_v58 }
 0x114   : > { %1880 = vmatprep.mubr.f32.mxu1 %v3740_v18 }
 0x117   : > { %2212 = vmatmul.mubr.msk.f32.gmra.mxu1 %vm381_vm0, %v3455_v36 }
 0x13b   : > { %v454_v28 = vpop.f32.mrf.mxu1 }
 0x13c   : > { %v614_v26 = vpop.f32.mrf.mxu0 }
 0x13d   : > { %v456_v35 = vpop.f32.mrf.mxu1  ;;  %v615_v20 = vadd.f32 %v614_v26, %v454_v28 }
 0x13e   : > { %v616_v39 = vpop.f32.mrf.mxu0 }
 0x13f   : > { %v617_v1 = vadd.f32 %v616_v39, %v456_v35 }
 0x148   : > { %v460_v62 = vpop.f32.mrf.mxu1  ;;  %v620_v16 = vpop.f32.mrf.mxu0 }
 0x149   : > { %v621_v44 = vadd.f32 %v620_v16, %v460_v62 }
 0x14a   : > { %v462_v25 = vpop.f32.mrf.mxu1  ;;  %v622_v43 = vpop.f32.mrf.mxu0 }
 0x14b   : > { %v623_v30 = vadd.f32 %v622_v43, %v462_v25  ;;  %v2410_v43 = vld [vmem:[#allocation8 + $0x48] sm:$0xff] }
 0x14f   : > { %v531_v29 = vpop.f32.mrf.mxu1 }
 0x150   : > { %v808_v49 = vpop.f32.mrf.mxu0 }
 0x151   : > { %v533_v32 = vpop.f32.mrf.mxu1  ;;  %v896_v59 = vadd.f32 %v808_v49, %v615_v20  ;;  %v3811_v49 = vld [vmem:[#allocation21_spill] sm:$0xff] }
 0x152   : > { %v810_v52 = vpop.f32.mrf.mxu0 }
 0x153   : > { %v897_v12 = vadd.f32 %v810_v52, %v617_v1  ;;  %v3813_v52 = vld [vmem:[#allocation23_spill] sm:$0xff] }
 0x155   : > { %v814_v61 = vpop.f32.mrf.mxu0 }
 0x156   : > { %v900_v1 = vadd.f32 %v814_v61, %v621_v44  ;;  %v2401_v44 = vld [vmem:[#allocation8 + $0xe0] sm:$0xff]  ;;  %v3815_v61 = vld [vmem:[#allocation25_spill] sm:$0xff] }
 0x157   : > { %v816_v10 = vpop.f32.mrf.mxu0 }
 0x158   : > { %v901_v34 = vadd.f32 %v816_v10, %v623_v30  ;;  %v3818_v10 = vld [vmem:[#allocation28_spill] sm:$0xff] }
 0x15c   : > { %v537_v37 = vpop.f32.mrf.mxu1 }
 0x15e   : > { %v539_v42 = vpop.f32.mrf.mxu1 }
 0x163   : > { %v691_v45 = vpop.f32.mrf.mxu1 }
 0x164   : > { %v1010_v14 = vpop.f32.mrf.mxu0  ;;  %v692_v33 = vadd.f32 %v691_v45, %v531_v29 }
 0x165   : > { %v693_v51 = vpop.f32.mrf.mxu1  ;;  %v1098_v41 = vadd.f32 %v1010_v14, %v896_v59  ;;  %v3819_v14 = vld [vmem:[#allocation29_spill] sm:$0xff] }
 0x166   : > { %v1012_v57 = vpop.f32.mrf.mxu0  ;;  %v694_v63 = vadd.f32 %v693_v51, %v533_v32  ;;  %v3812_v51 = vld [vmem:[#allocation22_spill] sm:$0xff] }
 0x167   : > { %v697_v55 = vpop.f32.mrf.mxu1  ;;  %v1099_v56 = vadd.f32 %v1012_v57, %v897_v12  ;;  %v1106_v25 = vmul.f32 %v1098_v41, %v1098_v41  ;;  %v2404_v41 = vld [vmem:[#allocation8 + $0xa8] sm:$0xff] }
 0x168   : > { %v1016_v8 = vpop.f32.mrf.mxu0  ;;  %v698_v50 = vadd.f32 %v697_v55, %v537_v37  ;;  %v3814_v55 = vld [vmem:[#allocation24_spill] sm:$0xff]  ;;  %v3821_v57 = vld [vmem:[#allocation31_spill] sm:$0xff] }
 0x169   : > { %v699_v4 = vpop.f32.mrf.mxu1  ;;  %v1107_v26 = vmul.f32 %v1099_v56, %v1099_v56  ;;  %v1102_v37 = vadd.f32 %v1016_v8, %v900_v1  ;;  %v2406_v56 = vld [vmem:[#allocation8 + $0x88] sm:$0xff]  ;;  %v3827_v1 = vld [vmem:[#allocation37_spill] sm:$0xff] }
 0x16a   : > { %v1018_v40 = vpop.f32.mrf.mxu0  ;;  %v700_v35 = vadd.f32 %v699_v4, %v539_v42  ;;  %v2408_v8 = vld [vmem:[#allocation8 + $0x68] sm:$0xff]  ;;  %v2409_v42 = vld [vmem:[#allocation8 + $0x60] sm:$0xff] }
 0x16b   : > { %v3816_v4 = vld [vmem:[#allocation26_spill] sm:$0xff] }
 0x173   : > { %v885_v6 = vpop.f32.mrf.mxu1 }
 0x174   : > { %v898_v60 = vadd.f32 %v885_v6, %v692_v33  ;;  %v1103_v33 = vadd.f32 %v1018_v40, %v901_v34  ;;  %v2402_v34 = vld [vmem:[#allocation8 + $0xc8] sm:$0xff]  ;;  %v2403_v40 = vld [vmem:[#allocation8 + $0xc0] sm:$0xff] }
 0x175   : > { %v887_v22 = vpop.f32.mrf.mxu1  ;;  %v3817_v6 = vld [vmem:[#allocation27_spill] sm:$0xff] }
 0x176   : > { %v899_v48 = vadd.f32 %v887_v22, %v694_v63  ;;  %v1109_v16 = vmul.f32 %v1103_v33, %v1103_v33  ;;  %v3820_v22 = vld [vmem:[#allocation30_spill] sm:$0xff] }
 0x177   : > { %v891_v2 = vpop.f32.mrf.mxu1  ;;  %v3832_v33 = vld [vmem:[#allocation42_spill] sm:$0xff] }
 0x178   : > { %v902_v29 = vadd.f32 %v891_v2, %v698_v50  ;;  %v1108_v50 = vmul.f32 %v1102_v37, %v1102_v37  ;;  %v3823_v2 = vld [vmem:[#allocation33_spill] sm:$0xff]  ;;  %v3837_v37 = vld [vmem:[#allocation47_spill] sm:$0xff] }
 0x179   : > { %v893_v24 = vpop.f32.mrf.mxu1 }
 0x17a   : > { %v903_v20 = vadd.f32 %v893_v24, %v700_v35  ;;  %v2407_v24 = vld [vmem:[#allocation8 + $0x80] sm:$0xff] }
 0x17b   : > { %v3824_v35 = vld [vmem:[#allocation34_spill] sm:$0xff] }
 0x183   : > { %v1087_v54 = vpop.f32.mrf.mxu1 }
 0x184   : > { %v1100_v47 = vadd.f32 %v1087_v54, %v898_v60 }
 0x185   : > { %v1089_v38 = vpop.f32.mrf.mxu1 }
 0x186   : > { %v1101_v28 = vadd.f32 %v1089_v38, %v899_v48  ;;  %v1110_v39 = vmul.f32 %v1100_v47, %v1100_v47  ;;  %v2405_v48 = vld [vmem:[#allocation8 + $0xa0] sm:$0xff] }
 0x187   : > { %v1093_v32 = vpop.f32.mrf.mxu1 }
 0x188   : > { %v1111_v12 = vmul.f32 %v1101_v28, %v1101_v28  ;;  %v1104_v45 = vadd.f32 %v1093_v32, %v902_v29  ;;  %v1114_v59 = vadd.f32 %v1110_v39, %v1106_v25  ;;  %v3825_v29 = vld [vmem:[#allocation35_spill] sm:$0xff]  ;;  %v3826_v28 = vld [vmem:[#allocation36_spill] sm:$0xff]  ;;  %v3831_v32 = vld [vmem:[#allocation41_spill] sm:$0xff] }
 0x189   : > { %v1095_v63 = vpop.f32.mrf.mxu1  ;;  %v3830_v39 = vld [vmem:[#allocation40_spill] sm:$0xff]  ;;  %v3836_v25 = vld [vmem:[#allocation46_spill] sm:$0xff] }
 0x18a   : > { %v1115_v54 = vadd.f32 %v1111_v12, %v1107_v26  ;;  %v1105_v60 = vadd.f32 %v1095_v63, %v903_v20  ;;  %v1112_v62 = vmul.f32 %v1104_v45, %v1104_v45  ;;  %v3828_v26 = vld [vmem:[#allocation38_spill] sm:$0xff]  ;;  %v3833_v20 = vld [vmem:[#allocation43_spill] sm:$0xff]  ;;  %v3834_v12 = vld [vmem:[#allocation44_spill] sm:$0xff] }
 0x18b   : > { %v3835_v45 = vld [vmem:[#allocation45_spill] sm:$0xff] }
 0x18c   : > { %v1113_v30 = vmul.f32 %v1105_v60, %v1105_v60  ;;  %1214 = vmatprep.mubr.f32.mxu0 %v1115_v54  ;;  %v1116_v47 = vadd.f32 %v1112_v62, %v1108_v50  ;;  %v3839_v63 = vld [vmem:[#allocation49_spill] sm:$0xff]  ;;  %v3840_v54 = vld [vmem:[#allocation50_spill] sm:$0xff]  ;;  %v3841_v60 = vld [vmem:[#allocation51_spill] sm:$0xff] }
 0x18d   : > { %1215 = vmatmul.mubr.f32.vlgmr.msra.gmra.mxu0 %v1114_v59  ;;  %v3842_v59 = vld [vmem:[#allocation52_spill] sm:$0xff]  ;;  %v3843_v62 = vld [vmem:[#allocation53_spill] sm:$0xff] }
 0x18e   : > { %v1117_v38 = vadd.f32 %v1113_v30, %v1109_v16  ;;  %1418 = vmatpush1.msra.mxu0 %v2401_v44  ;;  %v3844_v16 = vld [vmem:[#allocation54_spill] sm:$0xff]  ;;  %v3846_v30 = vld [vmem:[#allocation56_spill] sm:$0xff]  ;;  %v3847_v50 = vld [vmem:[#allocation57_spill] sm:$0xff] }
 0x18f   : > { %1419 = vmatprep.subr.mxu0 %v2402_v34  ;;  %v3864_v44 = vld [vmem:[#allocation73_spill] sm:$0xff]  ;;  %v3866_v34 = vld [vmem:[#allocation75_spill] sm:$0xff] }
 0x190   : > { %1420 = vmatpush1.msra.mxu0 %v2403_v40  ;;  %1219 = vmatprep.mubr.f32.mxu0 %v1117_v38  ;;  %v3863_v38 = vld [vmem:[#allocation72_spill] sm:$0xff] }
 0x191   : > { %1421 = vmatprep.subr.mxu0 %v2404_v41  ;;  %1220 = vmatmul.mubr.f32.gmra.mxu0 %v1116_v47  ;;  %v3865_v47 = vld [vmem:[#allocation74_spill] sm:$0xff]  ;;  %v3867_v40 = vld [vmem:[#allocation76_spill] sm:$0xff] }
 0x192   : > { %1422 = vmatpush1.msra.mxu0 %v2405_v48  ;;  %1465 = vmatprep.mubr.f32.mxu0 %v3740_v18 }
 0x193   : > { %1423 = vmatprep.subr.mxu0 %v2406_v56  ;;  %v1307_v41 = vpop.f32.mrf.mxu1 }
 0x194   : > { %1424 = vmatpush1.msra.mxu0 %v2407_v24 }
 0x195   : > { %1425 = vmatprep.subr.mxu0 %v2408_v8  ;;  %v1309_v48 = vpop.f32.mrf.mxu1 }
 0x196   : > { %1426 = vmatpush1.msra.mxu0 %v2409_v42 }
 0x197   : > { %1427 = vmatprep.subr.mxu0 %v2410_v43  ;;  %v1313_v56 = vpop.f32.mrf.mxu1 }
 0x198   : > { %1428 = vmatpush1.msra.mxu0 %v3811_v49 }
 0x199   : > { %1429 = vmatprep.subr.mxu0 %v3812_v51  ;;  %v1315_v24 = vpop.f32.mrf.mxu1 }
 0x19a   : > { %1430 = vmatpush1.msra.mxu0 %v3813_v52 }
 0x19b   : > { %1431 = vmatprep.subr.mxu0 %v3814_v55 }
 0x19c   : > { %1432 = vmatpush1.msra.mxu0 %v3815_v61 }
 0x19d   : > { %2201 = vmatmul.mubr.msk.f32.vlgmr.msra.gmra.mxu0 %vm381_vm0, %v3310_v15  ;;  %1579 = vmatprep.subr.mxu0 %v3816_v4  ;;  %v3822_v15 = vld [vmem:[#allocation32_spill] sm:$0xff] }
 0x19e   : > { %1580 = vmatpush1.msra.mxu0 %v3817_v6  ;;  %1471 = vmatprep.mubr.f32.mxu0 %v3740_v18 }
 0x19f   : > { %1581 = vmatprep.subr.mxu0 %v3818_v10 }
 0x1a0   : > { %1582 = vmatpush1.msra.mxu0 %v3819_v14 }
 0x1a1   : > { %2202 = vmatmul.mubr.msk.f32.gmra.mxu0 %vm381_vm0, %v3362_v46  ;;  %1583 = vmatprep.subr.mxu0 %v3820_v22  ;;  %v3829_v46 = vld [vmem:[#allocation39_spill] sm:$0xff] }
 0x1a2   : > { %1584 = vmatpush1.msra.mxu0 %v3821_v57  ;;  %1627 = vmatprep.mubr.f32.mxu0 %v3740_v18 }
 0x1a3   : > { %1585 = vmatprep.subr.mxu0 %v3822_v15  ;;  %v1384_v8 = vpop.f32.mrf.mxu1 }
 0x1a4   : > { %1586 = vmatpush1.msra.mxu0 %v3823_v2 }
 0x1a5   : > { %1587 = vmatprep.subr.mxu0 %v3824_v35  ;;  %v1386_v42 = vpop.f32.mrf.mxu1 }
 0x1a6   : > { %1588 = vmatpush1.msra.mxu0 %v3825_v29 }
 0x1a7   : > { %1589 = vmatprep.subr.mxu0 %v3826_v28  ;;  %v1390_v43 = vpop.f32.mrf.mxu1 }
 0x1a8   : > { %1590 = vmatpush1.msra.mxu0 %v3827_v1 }
 0x1a9   : > { %1591 = vmatprep.subr.mxu0 %v3828_v26  ;;  %v1392_v55 = vpop.f32.mrf.mxu1 }
 0x1aa   : > { %1592 = vmatpush1.msra.mxu0 %v3829_v46 }
 0x1ab   : > { %1593 = vmatprep.subr.mxu0 %v3830_v39 }
 0x1ac   : > { %1594 = vmatpush1.msra.mxu0 %v3831_v32 }
 0x1ad   : > { %2205 = vmatmul.mubr.msk.f32.vlgmr.msra.gmra.mxu0 %vm381_vm0, %v3384_v53  ;;  %1749 = vmatprep.subr.mxu0 %v3832_v33  ;;  %v3838_v53 = vld [vmem:[#allocation48_spill] sm:$0xff] }
 0x1ae   : > { %1750 = vmatpush1.msra.mxu0 %v3833_v20  ;;  %1633 = vmatprep.mubr.f32.mxu0 %v3740_v18 }
 0x1af   : > { %1751 = vmatprep.subr.mxu0 %v3834_v12 }
 0x1b0   : > { %1752 = vmatpush1.msra.mxu0 %v3835_v45 }
 0x1b1   : > { %2206 = vmatmul.mubr.msk.f32.gmra.mxu0 %vm381_vm0, %v3434_v3  ;;  %1753 = vmatprep.subr.mxu0 %v3836_v25  ;;  %v3845_v3 = vld [vmem:[#allocation55_spill] sm:$0xff] }
 0x1b2   : > { %1754 = vmatpush1.msra.mxu0 %v3837_v37  ;;  %1797 = vmatprep.mubr.f32.mxu0 %v3740_v18 }
 0x1b3   : > { %1755 = vmatprep.subr.mxu0 %v3838_v53  ;;  %v1544_v10 = vpop.f32.mrf.mxu1 }
 0x1b4   : > { %1756 = vmatpush1.msra.mxu0 %v3839_v63  ;;  %v1545_v12 = vadd.f32 %v1544_v10, %v1384_v8 }
 0x1b5   : > { %1757 = vmatprep.subr.mxu0 %v3840_v54  ;;  %v1546_v14 = vpop.f32.mrf.mxu1 }
 0x1b6   : > { %1758 = vmatpush1.msra.mxu0 %v3841_v60  ;;  %v1547_v33 = vadd.f32 %v1546_v14, %v1386_v42 }
 0x1b7   : > { %1759 = vmatprep.subr.mxu0 %v3842_v59 }
 0x1b8   : > { %1760 = vmatpush1.msra.mxu0 %v3843_v62 }
 0x1b9   : > { %1761 = vmatprep.subr.mxu0 %v3844_v16 }
 0x1ba   : > { %1762 = vmatpush1.msra.mxu0 %v3845_v3 }
 0x1bb   : > { %1763 = vmatprep.subr.mxu0 %v3846_v30  ;;  %v1550_v22 = vpop.f32.mrf.mxu1 }
 0x1bc   : > { %1764 = vmatpush1.msra.mxu0 %v3847_v50  ;;  %v1551_v54 = vadd.f32 %v1550_v22, %v1390_v43 }
 0x1bd   : > { %2209 = vmatmul.mubr.msk.f32.vlgmr.msra.gmra.mxu0 %vm381_vm0, %v3446_v58  ;;  %2257 = vmatprep.subr.mxu0 %v3289_v5  ;;  %v3849_v5 = vld [vmem:[#allocation59_spill] sm:$0xff]  ;;  %v3861_v58 = vld [vmem:[#allocation70_spill] sm:$0xff]  ;;  %v1552_v57 = vpop.f32.mrf.mxu1 }
 0x1be   : > { %1803 = vmatprep.mubr.f32.mxu0 %v3740_v18  ;;  %2258 = vmatpush3.msra.mxu0 %v3293_v0  ;;  %v3848_v18 = vld [vmem:[#allocation58_spill] sm:$0xff]  ;;  %v3850_v0 = vld [vmem:[#allocation60_spill] sm:$0xff]  ;;  %v1553_v53 = vadd.f32 %v1552_v57, %v1392_v55 }
 0x1bf   : > { %2259 = vmatprep.subr.mxu0 %v3295_v7  ;;  %v3851_v7 = vld [vmem:[#allocation61_spill] sm:$0xff] }
 0x1c0   : > { %2260 = vmatpush3.msra.mxu0 %v3297_v9  ;;  %v3852_v9 = vld [vmem:[#allocation62_spill] sm:$0xff] }
 0x1c1   : > { %2210 = vmatmul.mubr.msk.f32.gmra.mxu0 %vm381_vm0, %v3455_v36  ;;  %2261 = vmatprep.subr.mxu0 %v3301_v11  ;;  %v3853_v11 = vld [vmem:[#allocation63_spill] sm:$0xff] }
 0x1c2   : > { %2262 = vmatpush3.msra.mxu0 %v3305_v13  ;;  %v3854_v13 = vld [vmem:[#allocation64_spill] sm:$0xff]  ;;  %v3862_v36 = vld [vmem:[#allocation71_spill] sm:$0xff] }
 0x1c3   : > { %2263 = vmatprep.subr.mxu0 %v3314_v17  ;;  %v3855_v17 = vld [vmem:[#allocation65_spill] sm:$0xff]  ;;  %v1706_v2 = vpop.f32.mrf.mxu1 }
 0x1c4   : > { %2264 = vmatpush3.msra.mxu0 %v3321_v19  ;;  %v3856_v19 = vld [vmem:[#allocation66_spill] sm:$0xff]  ;;  %v1719_v60 = vadd.f32 %v1706_v2, %v1545_v12 }
 0x1c5   : > { %2265 = vmatprep.subr.mxu0 %v3325_v21  ;;  %v3857_v21 = vld [vmem:[#allocation67_spill] sm:$0xff]  ;;  %v1708_v29 = vpop.f32.mrf.mxu1 }
 0x1c6   : > { %2266 = vmatpush3.msra.mxu0 %v3329_v23  ;;  %v3858_v23 = vld [vmem:[#allocation68_spill] sm:$0xff]  ;;  %v1720_v25 = vadd.f32 %v1708_v29, %v1547_v33 }
 0x1c7   : > { %2267 = vmatprep.subr.mxu0 %v3333_v27  ;;  %v3859_v27 = vld [vmem:[#allocation69_spill] sm:$0xff] }
 0x1c8   : > { %2268 = vmatpush3.msra.mxu0 %v3337_v31  ;;  %v3860_v31 = vld [vmem:[#allocation77_spill] sm:$0xff] }
 0x1c9   : > { %2269 = vmatprep.subr.mxu0 %v3848_v18 }
 0x1ca   : > { %2270 = vmatpush3.msra.mxu0 %v3849_v5 }
 0x1cb   : > { %2271 = vmatprep.subr.mxu0 %v3850_v0 }
 0x1cc   : > { %2272 = vmatpush3.msra.mxu0 %v3851_v7 }
 0x1cd   : > { %2273 = vmatprep.subr.mxu0 %v3852_v9 }
 0x1ce   : > { %2274 = vmatpush3.msra.mxu0 %v3853_v11 }
 0x1cf   : > { %2275 = vmatprep.subr.mxu0 %v3854_v13  ;;  %v1712_v1 = vpop.f32.mrf.mxu1 }
 0x1d0   : > { %2276 = vmatpush3.msra.mxu0 %v3855_v17  ;;  %v1723_v9 = vadd.f32 %v1712_v1, %v1551_v54 }
 0x1d1   : > { %2277 = vmatprep.subr.mxu0 %v3856_v19  ;;  %v1714_v39 = vpop.f32.mrf.mxu1 }
 0x1d2   : > { %2278 = vmatpush3.msra.mxu0 %v3857_v21  ;;  %v1724_v18 = vadd.f32 %v1714_v39, %v1553_v53 }
 0x1d3   : > { %2279 = vmatprep.subr.mxu0 %v3858_v23  ;;  %v1876_v20 = vpop.f32.mrf.mxu1 }
 0x1d4   : > { %2280 = vmatpush3.msra.mxu0 %v3859_v27  ;;  %v1889_v11 = vadd.f32 %v1876_v20, %v1719_v60 }
 0x1d5   : > { %2281 = vmatprep.subr.mxu0 %v3860_v31  ;;  %v1878_v37 = vpop.f32.mrf.mxu1 }
 0x1d6   : > { %2282 = vmatpush3.msra.mxu0 %v3861_v58  ;;  %v1890_v30 = vadd.f32 %v1878_v37, %v1720_v25  ;;  %v1996_v37 = vstv %s1995_s21 }
 0x1d7   : > { %2283 = vmatprep.subr.mxu0 %v3862_v36  ;;  %v1882_v59 = vpop.f32.mrf.mxu1  ;;  %vm1997_vm1 = vcmp.eq.s32.totalorder %v1996_v37, 1 }
 0x1d8   : > { %2284 = vmatpush3.msra.mxu0 %v3863_v38  ;;  %v1900_v27 = vmul.f32 %v1890_v30, %v1890_v30 }
 0x1d9   : > { %2285 = vmatprep.subr.mxu0 %v3864_v44  ;;  %v1884_v13 = vpop.f32.mrf.mxu1 }
 0x1da   : > { %2286 = vmatpush3.msra.mxu0 %v3865_v47  ;;  %v1894_v36 = vadd.f32 %v1884_v13, %v1724_v18 }
 0x1db   : > { %2287 = vmatprep.subr.mxu0 %v3866_v34  ;;  %v1899_v34 = vmul.f32 %v1889_v11, %v1889_v11 }
 0x1dc   : > { %2288 = vmatpush3.msra.mxu0 %v3867_v40  ;;  %v1893_v40 = vadd.f32 %v1882_v59, %v1723_v9  ;;  %v1902_v43 = vmul.f32 %v1894_v36, %v1894_v36 }
 0x24d   : > { %v2251_v49 = vpop.f32.mrf.mxu0 }
 0x24f   : > { %v2252_v51 = vpop.f32.mrf.mxu0 }
 0x250   : > { %v3546_v52 = vadd.f32 %v2252_v51, %v2251_v49 }
 0x251   : > { %v2254_v61 = vpop.f32.mrf.mxu0 }
 0x253   : > { %v2255_v4 = vpop.f32.mrf.mxu0 }
 0x254   : > { %v3548_v6 = vadd.f32 %v2255_v4, %v2254_v61  ;;  %v1217_v61 = vadd.f32 1e-05, %v3546_v52 }
 0x256   : > { %2393 = vlog2.f32 %v1217_v61  ;;  %v1222_v10 = vadd.f32 1e-05, %v3548_v6 }
 0x258   : > { %2395 = vlog2.f32 %v1222_v10 }
 0x25d   : > { %v1467_v15 = vpop.f32.mrf.mxu0 }
 0x25e   : > { %v1468_v63 = vadd.f32 %v1467_v15, %v1307_v41 }
 0x25f   : > { %v1469_v35 = vpop.f32.mrf.mxu0 }
 0x260   : > { %v1470_v16 = vadd.f32 %v1469_v35, %v1309_v48 }
 0x261   : > { %v1473_v28 = vpop.f32.mrf.mxu0 }
 0x262   : > { %v1474_v5 = vadd.f32 %v1473_v28, %v1313_v56 }
 0x263   : > { %v1475_v26 = vpop.f32.mrf.mxu0  ;;  %v2394_v28 = vpop.eup %2393 }
 0x264   : > { %v1476_v19 = vadd.f32 %v1475_v26, %v1315_v24  ;;  %v1901_v24 = vmul.f32 %v1893_v40, %v1893_v40  ;;  %v1226_v1 = vmul.f32 0.6931472, %v2394_v28 }
 0x265   : > { %v2396_v26 = vpop.eup %2395 }
 0x266   : > { %v1229_v39 = vmul.f32 0.4342945, %v1226_v1 }
 0x26d   : > { %v1629_v46 = vpop.f32.mrf.mxu0 }
 0x26e   : > { %v1717_v3 = vadd.f32 %v1629_v46, %v1468_v63 }
 0x26f   : > { %v1631_v32 = vpop.f32.mrf.mxu0 }
 0x270   : > { %v1718_v0 = vadd.f32 %v1631_v32, %v1470_v16  ;;  %v1228_v32 = vmul.f32 0.6931472, %v2396_v26 }
 0x271   : > { %v1635_v45 = vpop.f32.mrf.mxu0 }
 0x272   : > { %v1721_v21 = vadd.f32 %v1635_v45, %v1474_v5  ;;  %v1230_v45 = vmul.f32 0.4342945, %v1228_v32 }
 0x273   : > { %v1637_v62 = vpop.f32.mrf.mxu0 }
 0x274   : > { %v1722_v38 = vadd.f32 %v1637_v62, %v1476_v19 }
 0x27d   : > { %v1799_v50 = vpop.f32.mrf.mxu0 }
 0x27e   : > { %v1887_v7 = vadd.f32 %v1799_v50, %v1717_v3 }
 0x27f   : > { %v1801_v17 = vpop.f32.mrf.mxu0 }
 0x280   : > { %v1888_v23 = vadd.f32 %v1801_v17, %v1718_v0  ;;  %v1895_v31 = vmul.f32 %v1887_v7, %v1887_v7 }
 0x281   : > { %v1805_v58 = vpop.f32.mrf.mxu0 }
 0x282   : > { %v1896_v44 = vmul.f32 %v1888_v23, %v1888_v23  ;;  %v1891_v47 = vadd.f32 %v1805_v58, %v1721_v21  ;;  %v1903_v8 = vadd.f32 %v1899_v34, %v1895_v31 }
 0x283   : > { %v1807_v41 = vpop.f32.mrf.mxu0 }
 0x284   : > { %v1904_v48 = vadd.f32 %v1900_v27, %v1896_v44  ;;  %v1892_v56 = vadd.f32 %v1807_v41, %v1722_v38  ;;  %v1897_v42 = vmul.f32 %v1891_v47, %v1891_v47 }
 0x286   : > { %v1898_v49 = vmul.f32 %v1892_v56, %v1892_v56  ;;  %1971 = vmatprep.mubr.f32.mxu0 %v1904_v48  ;;  %v1905_v55 = vadd.f32 %v1901_v24, %v1897_v42 }
 0x287   : > { %1972 = vmatmul.mubr.f32.vlgmr.msra.gmra.mxu0 %v1903_v8 }
 0x288   : > { %v1906_v51 = vadd.f32 %v1902_v43, %v1898_v49 }
 0x28a   : > { %1976 = vmatprep.mubr.f32.mxu0 %v1906_v51 }
 0x28b   : > { %1977 = vmatmul.mubr.f32.gmra.mxu0 %v1905_v55 }
 0x347   : > { %v2289_v4 = vpop.f32.mrf.mxu0 }
 0x349   : > { %v2290_v14 = vpop.f32.mrf.mxu0 }
 0x34a   : > { %v2291_v22 = vadd.f32 %v2290_v14, %v2289_v4 }
 0x34b   : > { %v2292_v57 = vpop.f32.mrf.mxu0 }
 0x34c   : > { %v1974_v15 = vadd.f32 1e-05, %v2291_v22 }
 0x34d   : > { %v2293_v2 = vpop.f32.mrf.mxu0 }
 0x34e   : > { %2397 = vlog2.f32 %v1974_v15  ;;  %v2294_v35 = vadd.f32 %v2293_v2, %v2292_v57 }
 0x350   : > { %v1979_v29 = vadd.f32 1e-05, %v2294_v35 }
 0x352   : > { %2399 = vlog2.f32 %v1979_v29 }
 0x35b   : > { %v2398_v52 = vpop.eup %2397 }
 0x35c   : > { %v1983_v46 = vmul.f32 0.6931472, %v2398_v52 }
 0x35e   : > { %v1986_v33 = vmul.f32 0.4342945, %v1983_v46 }
 0x35f   : > { %v2400_v6 = vpop.eup %2399 }
 0x360   : > { %v1985_v20 = vmul.f32 0.6931472, %v2400_v6  ;;  %v2002_v12 = vsub.f32 %v1229_v39, %v1986_v33 }
 0x362   : > { %v1987_v25 = vmul.f32 0.4342945, %v1985_v20  ;;  %v2004_v63 = vand.u32 2147483647, %v2002_v12 }
 0x364   : > { %v2003_v53 = vsub.f32 %v1230_v45, %v1987_v25  ;;  %v2010_v60 = vsel %vm1997_vm1, %v2004_v63, 0.0 }
 0x366   : > { %v2005_v54 = vand.u32 2147483647, %v2003_v53 }
 0x368   : > { %v2011_v59 = vsel %vm1997_vm1, %v2005_v54, 0.0 }
 0x369   : > { %v2021_v62 = vadd.f32 %v2011_v59, %v2010_v60 }
 0x36b   : > { %2022 = vadd.xlane.f32.xlu0 %v2021_v62 }
 0x3f4   : > { %v2023_v16 = vpop.xlane.xlu0 %2022 }
 0x3f5   : > { %v2024_v3 = vrot.slane %v2023_v16, 4 }
 0x3f7   : > { %v2025_v30 = vadd.f32 %v2024_v3, %v2023_v16 }
 0x3f9   : > { %v2026_v50 = vrot.slane %v2025_v30, 2 }
 0x3fb   : > { %v2027_v18 = vadd.f32 %v2026_v50, %v2025_v30 }
 0x3fd   : > { %v2028_v5 = vrot.slane %v2027_v18, 1 }
 0x3ff   : > { %v2029_v0 = vadd.f32 %v2028_v5, %v2027_v18 }
 0x401   : > { %2298 = vpush %v2029_v0 }
 0x432   : > { %s2299_s9 = spop %2298 }
 0x433   : > { %v2031_v7 = vstv %s2299_s9 }
 0x434   : > { %2032 = vst [vmem:[%s302_s5] sm:$0xff] %v2031_v7 }
 0x435   : > { %2532 = shalt.err (!%p2529_p2)
}
 0x436   : > { %s2533_s28 = scalar_lea.hbm %s2045_s8, 128  ;;  %s2537_s3 = scalar_lea.hbm %s3604_s4, 256 }
 0x437   : > { %p2534_p6 = scmp.ne.s32.totalorder %s2045_s8, %s2533_s28  ;;  %p2538_p0 = scmp.lt.s32.totalorder %s2045_s8, %s3604_s4 }
 0x438   : > { %p2539_p12 = scmp.lt.s32.totalorder %s2537_s3, %s2533_s28 }
 0x439   : > { %p2535_p8 = pnand %p2534_p6, %p2742_p9 }
 0x43a   : > { %p2540_p4 = por %p2539_p12, %p2538_p0 }
 0x43b   : > { %p2536_p11 = pneg %p2535_p8 }
 0x43d   : > { %p2541_p3 = pnand %p2540_p4, %p2536_p11 }
 0x43f   : > { %2544 = shalt.err (!%p2541_p3)
}
 0x440   : > { %2312 = dma.vmem_to_hbm [thread:$0]  (%p2742_p9), %s3555_s6, 128, %s2045_s8, %s2034_s10  }
 0x441 PF: > { %s2059_s22 = sand.u32 1, %s2591_s15   ;;  %p3868_p7 = scmp.ne.s32.totalorder %s3696_s24, 0 }
 0x442   : > { %p3869_p13 = scmp.ge.s32.totalorder %s2611_s20, 2  ;;  %s2060_s25 = scalar_lea.sflag [#allocation5], %s2059_s22 }
 0x444   : > { %p2329_p5 = pnand %p3869_p13, %p3868_p7 }
 0x446   : > { %p2330_p10 = pneg %p2329_p5 }
 0x448   : > { %2586 = dma.done.wait (%p2330_p10), %s2060_s25, 128  }
 0x449   : > { %2588 = vsyncadd (%p2330_p10), %s2060_s25, 4294967168  ;;  %s24_s20 = sadd.s32 1, %s2611_s20   ;;  %s3870_s27 = sld [smem:[#allocation19_spill]] }
 0x44a   : > { %p21_p1 = scmp.ge.s32.totalorder %s24_s20, 4   ;;  %s3871_s18 = sld [smem:[#allocation17_spill]] }
 0x44b   : > { %s3872_s19 = sld [smem:[#allocation18_spill]]  ;;  %s3873_s15 = smov %s2595_s16 }
 0x44c   : > { %s3874_s16 = smov %s2599_s17  ;;  %23 = sbr.rel (!%p21_p1) target bundleno = 13 (0xd), region = 110 }
 0x44f   : > { %s3875_s17 = smov %s3870_s27 }
 0x451   :  { %2065 = vsyncpa [#allocation4], 1 }
 0x452   :  { %2067 = vsyncpa [#allocation4 + $0x1], 1 }
 0x453   :  { %2068 = vsyncpa [#allocation7], 1 }
 0x454   :  { %2070 = vsyncpa [#allocation7 + $0x1], 1 }
 0x455   :  { %2071 = vsyncpa [#allocation10], 1 }
 0x456   :  { %2072 = vsyncpa [#allocation5], 1 }
 0x457   :  { %2074 = vsyncpa [#allocation5 + $0x1], 1 }

</bundles_post_ra>
